<compile_context>
chip_gen: v5e
topology: v5e:2x2
jax: 0.10.0
libtpu: 0.0.40
codegen_flags: <defaults>
</compile_context>

<pallas_src>
import jax
import jax.numpy as jnp
from jax.experimental import pallas as pl
from jax.experimental.pallas import tpu as pltpu

LANE = 128  # TPU lane width — final projection is padded to this for dense vst


def _round_up(x, m):
    return (x + m - 1) // m * m


def _mlp_kernel(x_ref, w1_ref, b1_ref, w2_ref, b2_ref, w3_ref, b3_ref, o_ref):
    # One (TM, d_in) row tile per grid step.  Weight/bias blocks have constant
    # index_maps (and Buffered(1)), so they stay VMEM-resident across steps.

    # Layer 1: K = d_in is tiny (e.g. 32) -> keep it f32 for accuracy; cost is
    # negligible relative to the d_hidden x d_hidden layer 2.
    h = jnp.dot(x_ref[...].astype(jnp.float32), w1_ref[...],
                preferred_element_type=jnp.float32) + b1_ref[...]
    h = jnp.maximum(h, 0.0)

    # Layers 2 & 3: bf16 MXU operands, f32 accumulation; bias/ReLU in f32.
    h = jnp.dot(h.astype(jnp.bfloat16), w2_ref[...],
                preferred_element_type=jnp.float32) + b2_ref[...]
    h = jnp.maximum(h, 0.0)

    # Final projection: output columns pre-padded to LANE so this store is a
    # full-lane unmasked vst (n_quantiles=8 alone would force masked stores).
    out = jnp.dot(h.astype(jnp.bfloat16), w3_ref[...],
                  preferred_element_type=jnp.float32) + b3_ref[...]
    o_ref[...] = out.astype(o_ref.dtype)


def prepare_params(params):
    """One-time weight prep, hoisted out of the forward path (cast + lane-pad)."""
    nq = params["w3"].shape[1]
    nq_pad = _round_up(nq, LANE)
    return {
        "w1": params["w1"].astype(jnp.float32),
        "b1": params["b1"].reshape(1, -1).astype(jnp.float32),
        "w2": params["w2"].astype(jnp.bfloat16),
        "b2": params["b2"].reshape(1, -1).astype(jnp.float32),
        "w3": jnp.pad(params["w3"], ((0, 0), (0, nq_pad - nq))).astype(jnp.bfloat16),
        "b3": jnp.pad(params["b3"].reshape(1, -1),
                      ((0, 0), (0, nq_pad - nq))).astype(jnp.float32),
        "nq": int(nq),  # static: true number of quantile outputs
    }


def quantile_value_proj(x, prepared, *, block_rows=1024):
    """Forward pass: x (..., d_in) -> (..., n_quantiles). `prepared` from prepare_params."""
    *lead, d_in = x.shape
    d_hidden = prepared["w1"].shape[1]
    nq = prepared["nq"]
    nq_pad = prepared["w3"].shape[1]

    # --- fold every leading dim into the matmul M dimension ---
    m = 1
    for s in lead:
        m *= s
    x2 = x.reshape(m, d_in)

    # Row tile: multiple of 8 (sublane).  Big default (1024) amortizes the
    # ~0.35us per-grid-step overhead; per-step VMEM stays ~8-9 MiB.
    tm = min(block_rows, _round_up(m, 8))
    if m > 8 and _round_up(m, 8) <= block_rows:
        # Whole problem would be a single grid step -> split into >= 2 steps so
        # v7x's second TensorCore isn't idle (harmless on single-TC v5e/v6e).
        tm = _round_up((m + 1) // 2, 8)
    m_pad = _round_up(m, tm)
    if m_pad != m:  # pad x only when actually needed (avoids an extra HBM pass)
        x2 = jnp.pad(x2, ((0, m_pad - m), (0, 0)))

    out_dtype = x.dtype  # explicit choice: output follows input dtype
    x_b = x2.dtype.itemsize
    out_b = jnp.dtype(out_dtype).itemsize

    # Explicit VMEM budget: double-buffered x/out tiles + single-buffered
    # resident weights + the f32/bf16 h intermediates between the three GEMMs.
    weight_bytes = (d_in * d_hidden * 4 + d_hidden * d_hidden * 2
                    + d_hidden * nq_pad * 2 + (2 * d_hidden + nq_pad) * 4)
    budget = (2 * tm * d_in * x_b + 2 * tm * nq_pad * out_b
              + weight_bytes + tm * d_hidden * 12 + tm * nq_pad * 4)
    # floor at 16 MiB (v5e default), cap at 48 MiB (v7x has 64 MiB physical).
    vmem_limit = int(min(max(2 * budget + (4 << 20), 16 << 20), 48 << 20))

    grid = (m_pad // tm,)

    def resident(arr):
        # Constant index_map -> never re-DMA'd across grid steps; single-buffer
        # so the resident copy doesn't cost 2x VMEM (matters as d_hidden grows,
        # especially on v7x's smaller VMEM).
        return pl.BlockSpec(arr.shape, lambda i: (0,) * arr.ndim,
                            pipeline_mode=pl.Buffered(1))

    flops = 2 * m_pad * (d_in * d_hidden + d_hidden * d_hidden + d_hidden * nq_pad)
    bytes_accessed = m_pad * d_in * x_b + weight_bytes + m_pad * nq_pad * out_b

    # TODO(synk): for d_hidden far beyond VMEM, add an "arbitrary" reduction grid
    # axis over d_hidden with a pl.when-initialized accumulator instead of
    # keeping w2 fully resident; unnecessary at d_hidden=512.
    out = pl.pallas_call(
        _mlp_kernel,
        out_shape=jax.ShapeDtypeStruct((m_pad, nq_pad), out_dtype),
        grid_spec=pltpu.PrefetchScalarGridSpec(
            num_scalar_prefetch=0,
            grid=grid,
            in_specs=[
                pl.BlockSpec((tm, d_in), lambda i: (i, 0)),
                resident(prepared["w1"]), resident(prepared["b1"]),
                resident(prepared["w2"]), resident(prepared["b2"]),
                resident(prepared["w3"]), resident(prepared["b3"]),
            ],
            out_specs=pl.BlockSpec((tm, nq_pad), lambda i: (i, 0)),
        ),
        compiler_params=pltpu.CompilerParams(
            dimension_semantics=("parallel",),   # row tiles independent -> 2-TC sharding
            vmem_limit_bytes=vmem_limit,
        ),
        cost_estimate=pl.CostEstimate(
            flops=flops, transcendentals=0, bytes_accessed=bytes_accessed),
    )(x2, prepared["w1"], prepared["b1"], prepared["w2"], prepared["b2"],
      prepared["w3"], prepared["b3"])

    # Strip row padding and lane padding, restore leading dims.
    return out[:m, :nq].reshape(*lead, nq)


def init_params(key, d_in, d_hidden=512, n_quantiles=8):
    # Weights stored as (in, out), i.e. transposed vs PyTorch nn.Linear (out, in),
    # so the kernel computes out = in @ W + b.  PyTorch default init ranges.
    ks = jax.random.split(key, 6)

    def linear(kw, kb, fan_in, fan_out):
        bound = 1.0 / (fan_in ** 0.5)
        w = jax.random.uniform(kw, (fan_in, fan_out), jnp.float32, -bound, bound)
        b = jax.random.uniform(kb, (1, fan_out), jnp.float32, -bound, bound)
        return w, b

    w1, b1 = linear(ks[0], ks[1], d_in, d_hidden)
    w2, b2 = linear(ks[2], ks[3], d_hidden, d_hidden)
    w3, b3 = linear(ks[4], ks[5], d_hidden, n_quantiles)
    return {"w1": w1, "b1": b1, "w2": w2, "b2": b2, "w3": w3, "b3": b3}


def _reference(x, params):
    h = jnp.maximum(x @ params["w1"] + params["b1"], 0.0)
    h = jnp.maximum(h @ params["w2"] + params["b2"], 0.0)
    return h @ params["w3"] + params["b3"]


if __name__ == "__main__":
    # Small shapes consistent with the module: d_in=32, d_hidden=512 (default),
    # n_quantiles=8, batch of (2, 8) rows.
    B, S, d_in, d_hidden, n_q = 2, 8, 32, 512, 8

    key = jax.random.PRNGKey(0)
    kx, kp = jax.random.split(key)
    x = jax.random.normal(kx, (B, S, d_in), jnp.float32)
    params = init_params(kp, d_in, d_hidden, n_q)
    prepared = prepare_params(params)          # one-time weight prep (cast + pad)

    out = quantile_value_proj(x, prepared)
    jax.block_until_ready(out)
    assert out.shape == (B, S, n_q)

    # Check vs a pure-f32 reference (kernel uses bf16 operands on layers 2/3).
    ref = _reference(x.reshape(-1, d_in), params).reshape(B, S, n_q)
    rel_err = float(jnp.max(jnp.abs(out - ref)) / (jnp.max(jnp.abs(ref)) + 1e-6))
    assert rel_err < 5e-2, f"mismatch vs reference: rel_err={rel_err}"

    print("KERNEL_OK")
</pallas_src>

<mosaic_0001>
module attributes {stable_mosaic.version = 11 : i64} {
  func.func @_mlp_kernel(%arg0: i32, %arg1: memref<8x32xf32, #tpu.memory_space<vmem>>, %arg2: memref<32x512xf32, #tpu.memory_space<vmem>>, %arg3: memref<1x512xf32, #tpu.memory_space<vmem>>, %arg4: memref<512x512xbf16, #tpu.memory_space<vmem>>, %arg5: memref<1x512xf32, #tpu.memory_space<vmem>>, %arg6: memref<512x128xbf16, #tpu.memory_space<vmem>>, %arg7: memref<1x128xf32, #tpu.memory_space<vmem>>, %arg8: memref<8x128xf32, #tpu.memory_space<vmem>>) attributes {dimension_semantics = [#tpu.dimension_semantics<parallel>], iteration_bounds = array<i64: 2>, scalar_prefetch = 0 : i64, scratch_operands = 0 : i64, tpu.core_type = #tpu.core_type<tc>, window_params = [{transform_indices = @transform_0, window_bounds = array<i64: 8, 32>}, {pipeline_mode = #tpu.pipeline_mode<synchronous>, transform_indices = @transform_1, window_bounds = array<i64: 32, 512>}, {pipeline_mode = #tpu.pipeline_mode<synchronous>, transform_indices = @transform_2, window_bounds = array<i64: 1, 512>}, {pipeline_mode = #tpu.pipeline_mode<synchronous>, transform_indices = @transform_3, window_bounds = array<i64: 512, 512>}, {pipeline_mode = #tpu.pipeline_mode<synchronous>, transform_indices = @transform_4, window_bounds = array<i64: 1, 512>}, {pipeline_mode = #tpu.pipeline_mode<synchronous>, transform_indices = @transform_5, window_bounds = array<i64: 512, 128>}, {pipeline_mode = #tpu.pipeline_mode<synchronous>, transform_indices = @transform_6, window_bounds = array<i64: 1, 128>}, {transform_indices = @transform_7, window_bounds = array<i64: 8, 128>}]} {
    %c0 = arith.constant 0 : index
    %c0_0 = arith.constant 0 : index
    %0 = vector.load %arg1[%c0, %c0_0] : memref<8x32xf32, #tpu.memory_space<vmem>>, vector<8x32xf32>
    %c0_1 = arith.constant 0 : index
    %c0_2 = arith.constant 0 : index
    %1 = vector.load %arg2[%c0_1, %c0_2] : memref<32x512xf32, #tpu.memory_space<vmem>>, vector<32x512xf32>
    %cst = arith.constant dense<0.000000e+00> : vector<8x512xf32>
    %2 = tpu.matmul %0, %1, %cst {dimension_numbers = #tpu.dot_dimension_numbers<[1], [0], [0], [1], [0, 0, 1, 1], [], []>} : vector<8x32xf32>, vector<32x512xf32>, vector<8x512xf32> -> vector<8x512xf32>
    %c0_3 = arith.constant 0 : index
    %c0_4 = arith.constant 0 : index
    %3 = vector.load %arg3[%c0_3, %c0_4] : memref<1x512xf32, #tpu.memory_space<vmem>>, vector<1x512xf32>
    %4 = vector.broadcast %3 : vector<1x512xf32> to vector<8x512xf32>
    %5 = arith.addf %2, %4 : vector<8x512xf32>
    %cst_5 = arith.constant 0.000000e+00 : f32
    %6 = vector.broadcast %cst_5 : f32 to vector<8x512xf32>
    %7 = arith.maximumf %5, %6 : vector<8x512xf32>
    %8 = arith.truncf %7 : vector<8x512xf32> to vector<8x512xbf16>
    %c0_6 = arith.constant 0 : index
    %c0_7 = arith.constant 0 : index
    %9 = vector.load %arg4[%c0_6, %c0_7] : memref<512x512xbf16, #tpu.memory_space<vmem>>, vector<512x512xbf16>
    %cst_8 = arith.constant dense<0.000000e+00> : vector<8x512xf32>
    %10 = tpu.matmul %8, %9, %cst_8 {dimension_numbers = #tpu.dot_dimension_numbers<[1], [0], [0], [1], [0, 0, 1, 1], [], []>} : vector<8x512xbf16>, vector<512x512xbf16>, vector<8x512xf32> -> vector<8x512xf32>
    %c0_9 = arith.constant 0 : index
    %c0_10 = arith.constant 0 : index
    %11 = vector.load %arg5[%c0_9, %c0_10] : memref<1x512xf32, #tpu.memory_space<vmem>>, vector<1x512xf32>
    %12 = vector.broadcast %11 : vector<1x512xf32> to vector<8x512xf32>
    %13 = arith.addf %10, %12 : vector<8x512xf32>
    %cst_11 = arith.constant 0.000000e+00 : f32
    %14 = vector.broadcast %cst_11 : f32 to vector<8x512xf32>
    %15 = arith.maximumf %13, %14 : vector<8x512xf32>
    %16 = arith.truncf %15 : vector<8x512xf32> to vector<8x512xbf16>
    %c0_12 = arith.constant 0 : index
    %c0_13 = arith.constant 0 : index
    %17 = vector.load %arg6[%c0_12, %c0_13] : memref<512x128xbf16, #tpu.memory_space<vmem>>, vector<512x128xbf16>
    %cst_14 = arith.constant dense<0.000000e+00> : vector<8x128xf32>
    %18 = tpu.matmul %16, %17, %cst_14 {dimension_numbers = #tpu.dot_dimension_numbers<[1], [0], [0], [1], [0, 0, 1, 1], [], []>} : vector<8x512xbf16>, vector<512x128xbf16>, vector<8x128xf32> -> vector<8x128xf32>
    %c0_15 = arith.constant 0 : index
    %c0_16 = arith.constant 0 : index
    %19 = vector.load %arg7[%c0_15, %c0_16] : memref<1x128xf32, #tpu.memory_space<vmem>>, vector<1x128xf32>
    %20 = vector.broadcast %19 : vector<1x128xf32> to vector<8x128xf32>
    %21 = arith.addf %18, %20 : vector<8x128xf32>
    %c0_17 = arith.constant 0 : index
    %c0_18 = arith.constant 0 : index
    %22 = vector.load %arg8[%c0_17, %c0_18] : memref<8x128xf32, #tpu.memory_space<vmem>>, vector<8x128xf32>
    tpu.vector_store %arg8[%c0_17, %c0_18], %21 {strides = array<i32>} : memref<8x128xf32, #tpu.memory_space<vmem>>, vector<8x128xf32>,
    return
  }
  func.func @transform_0(%arg0: i32) -> (i32, i32) {
    %c0_i32 = arith.constant 0 : i32
    %c0_i32_0 = arith.constant 0 : i32
    return %arg0, %c0_i32 : i32, i32
  }
  func.func @transform_1(%arg0: i32) -> (i32, i32) {
    %c0_i32 = arith.constant 0 : i32
    %c0_i32_0 = arith.constant 0 : i32
    %c0_i32_1 = arith.constant 0 : i32
    return %c0_i32, %c0_i32_0 : i32, i32
  }
  func.func @transform_2(%arg0: i32) -> (i32, i32) {
    %c0_i32 = arith.constant 0 : i32
    %c0_i32_0 = arith.constant 0 : i32
    %c0_i32_1 = arith.constant 0 : i32
    return %c0_i32, %c0_i32_0 : i32, i32
  }
  func.func @transform_3(%arg0: i32) -> (i32, i32) {
    %c0_i32 = arith.constant 0 : i32
    %c0_i32_0 = arith.constant 0 : i32
    %c0_i32_1 = arith.constant 0 : i32
    return %c0_i32, %c0_i32_0 : i32, i32
  }
  func.func @transform_4(%arg0: i32) -> (i32, i32) {
    %c0_i32 = arith.constant 0 : i32
    %c0_i32_0 = arith.constant 0 : i32
    %c0_i32_1 = arith.constant 0 : i32
    return %c0_i32, %c0_i32_0 : i32, i32
  }
  func.func @transform_5(%arg0: i32) -> (i32, i32) {
    %c0_i32 = arith.constant 0 : i32
    %c0_i32_0 = arith.constant 0 : i32
    %c0_i32_1 = arith.constant 0 : i32
    return %c0_i32, %c0_i32_0 : i32, i32
  }
  func.func @transform_6(%arg0: i32) -> (i32, i32) {
    %c0_i32 = arith.constant 0 : i32
    %c0_i32_0 = arith.constant 0 : i32
    %c0_i32_1 = arith.constant 0 : i32
    return %c0_i32, %c0_i32_0 : i32, i32
  }
  func.func @transform_7(%arg0: i32) -> (i32, i32) {
    %c0_i32 = arith.constant 0 : i32
    %c0_i32_0 = arith.constant 0 : i32
    return %arg0, %c0_i32 : i32, i32
  }
}

</mosaic_0001>

<bundles_post_ra>
// kernel: tpu_custom_call.1
= control target key start
LH: loop header
LB: loop body
LE: loop exit
PB: predicated region body
PF: predicated region fallthrough
CT: control target
= control target key end

     0   :  { %s3390_s0 = inlined_call_operand.hbm [shape: f32[16,32], index: 0, kind: input, shape index: {}]   ;;  %s3391_s1 = inlined_call_operand.hbm [shape: f32[32,512], index: 1, kind: input, shape index: {}]   ;;  %s3392_s2 = inlined_call_operand.hbm [shape: f32[1,512], index: 2, kind: input, shape index: {}]   ;;  %s3393_s3 = inlined_call_operand.hbm [shape: bf16[512,512], index: 3, kind: input, shape index: {}]   ;;  %s3394_s4 = inlined_call_operand.hbm [shape: f32[1,512], index: 4, kind: input, shape index: {}]   ;;  %s3395_s5 = inlined_call_operand.hbm [shape: bf16[512,128], index: 5, kind: input, shape index: {}]   ;;  %s3396_s6 = inlined_call_operand.vmem [shape: f32[1,128], index: 6, kind: input, shape index: {}]   ;;  %s3397_s7 = inlined_call_operand.hbm [shape: f32[16,128], index: 7, kind: output, shape index: {}]  }
   0x1   :  { %3398 = sst [smem:[#allocation19_spill]] %s3391_s1 }
   0x2   :  { %12 = vsyncpa [#allocation3], 0 }
   0x3   :  { %14 = vsyncpa [#allocation3 + $0x1], 0 }
   0x4   :  { %15 = vsyncpa [#allocation6], 0 }
   0x5   :  { %16 = vsyncpa [#allocation9], 0 }
   0x6   :  { %17 = vsyncpa [#allocation12], 0 }
   0x7   :  { %18 = vsyncpa [#allocation4], 0 }
   0x8   :  { %20 = vsyncpa [#allocation4 + $0x1], 0  ;;  %s3176_s24 = smov 0   ;;  %s3178_s25 = smov 0  }
   0x9   :  { %s3180_s26 = smov 0   ;;  %s3182_s27 = smov 0  }
   0xa LB: > { %s3399_s1 = sld [smem:[#allocation19_spill]]  ;;  %s3200_s8 = sadd.s32 4294967295, %s3123_s27   ;;  %s3123_s27 = sphi %s3182_s27, %s3410_s27   ;;  %s3119_s26 = sphi %s3180_s26, %s3409_s26   ;;  %s3115_s25 = sphi %s3178_s25, %s3408_s25   ;;  %s3111_s24 = sphi %s3176_s24, %s3407_s24  }
   0xb   : > { %p1936_p0 = scmp.ge.s32.totalorder %s3123_s27, 1  ;;  %p47_p1 = scmp.eq.s32.totalorder %s3200_s8, 0 }
   0xc   : > { %p209_p2 = scmp.lt.s32.totalorder %s3123_s27, 3  ;;  %s3125_s10 = smov [#allocation5]  }
   0xd   : > { %s222_s11 = sshll.u32 %s3125_s10, 4  ;;  %s246_s14 = sshll.u32 %s3393_s3, 4  ;;  %s223_s11 = int_to_ptr.vmem [resolvable:$true] %s222_s11  ;;  %s247_s14 = int_to_ptr.hbm [resolvable:$true] %s246_s14 }
   0xe   : > { %p3205_p3 = pnand %p1936_p0, %p209_p2  ;;  %s3126_s16 = smov [#allocation8]  }
   0xf   : > { %s248_s17 = sshll.u32 %s3126_s16, 4  ;;  %s3127_s18 = smov 512   ;;  %s249_s17 = int_to_ptr.vmem [resolvable:$true] %s248_s17 }
  0x10   : > { %s220_s30 = sshll.u32 %s3399_s1, 4  ;;  %p2785_p4 = pneg %p3205_p3  ;;  %s221_s30 = int_to_ptr.hbm [resolvable:$true] %s220_s30 }
  0x11   : > { %s3128_s19 = smov 32   ;;  %s3129_s20 = smov 256  }
  0x12   : > { %p3217_p6 = pnand %p2785_p4, %p47_p1  ;;  %s3130_s21 = smov 16  }
  0x13   : > { %s235_s28 = sshll.u32 %s3392_s2, 4  ;;  %s3131_s29 = smov [#allocation7]   ;;  %s236_s28 = int_to_ptr.hbm [resolvable:$true] %s235_s28 }
  0x14   : > { %2788 = dma.hbm_to_vmem [thread:$0]  (!%p3217_p6), %s221_s30, 2048, %s223_s11, [#allocation6], %s3127_s18, %s3127_s18, %s3128_s19  }
  0x15   : > { %2794 = dma.hbm_to_vmem [thread:$0]  (!%p3217_p6), %s247_s14, 16384, %s249_s17, [#allocation9], %s3129_s20, %s3129_s20, %s3130_s21  }
  0x16   : > { %s237_s10 = sshll.u32 %s3131_s29, 4  ;;  %s261_s30 = sshll.u32 %s3394_s4, 4  ;;  %s238_s10 = int_to_ptr.vmem [resolvable:$true] %s237_s10  ;;  %s262_s30 = int_to_ptr.hbm [resolvable:$true] %s261_s30 }
  0x17   : > { %2791 = dma.hbm_to_vmem [thread:$0]  (!%p3217_p6), %s236_s28, 64, %s238_s10, [#allocation6]  }
  0x18   : > { %s3132_s11 = smov [#allocation10]   ;;  %s272_s18 = sshll.u32 %s3395_s5, 4  ;;  %s273_s18 = int_to_ptr.hbm [resolvable:$true] %s272_s18 }
  0x19   : > { %s263_s14 = sshll.u32 %s3132_s11, 4  ;;  %s3133_s19 = smov [#allocation11]   ;;  %s264_s14 = int_to_ptr.vmem [resolvable:$true] %s263_s14 }
  0x1a   : > { %2797 = dma.hbm_to_vmem [thread:$0]  (!%p3217_p6), %s262_s30, 64, %s264_s14, [#allocation9]  }
  0x1b   : > { %s274_s20 = sshll.u32 %s3133_s19, 4  ;;  %s3134_s21 = smov 64   ;;  %s275_s20 = int_to_ptr.vmem [resolvable:$true] %s274_s20 }
  0x1c   : > { %s3135_s22 = smov 4   ;;  %s1935_s23 = sadd.s32 4294967294, %s3123_s27  }
  0x1d   : > { %2800 = dma.hbm_to_vmem [thread:$0]  (!%p3217_p6), %s273_s18, 4096, %s275_s20, [#allocation12], %s3134_s21, %s3134_s21, %s3135_s22  }
  0x1e   : > { %s3242_s28 = sadd.s32 1, %s3123_s27   ;;  %s33_s29 = sadd.s32 1, %s3119_s26 }
  0x1f   : > { %s30_s10 = ssub.s32 %s3123_s27, %s3242_s28  ;;  %p40_p7 = scmp.ne.s32.totalorder %s3119_s26, %s3115_s25 }
  0x20   : > { %p31_p8 = scmp.eq.s32.totalorder %s30_s10, 0  ;;  %p41_p9 = scmp.eq.s32.totalorder %s3123_s27, 0 }
  0x21   : > { %p46_p10 = scmp.ne.s32.totalorder %s3115_s25, %s3111_s24  ;;  %p196_p11 = scmp.eq.s32.totalorder %s3200_s8, 1 }
  0x22   : > { %s3254_s12 = scalar_select %p31_p8, %s3119_s26, %s33_s29  }
  0x23   : > { %p3258_p12 = por %p47_p1, %p46_p10  ;;  %p3262_p13 = por %p196_p11, %p40_p7 }
  0x24   : > { %p202_p0 = scmp.eq.s32.totalorder %s1935_s23, 1  ;;  %p42_p2 = por %p41_p9, %p40_p7 }
  0x25   : > { %s291_s30 = sand.u32 1, %s3119_s26   ;;  %p2814_p6 = scmp.lt.s32.totalorder %s3123_s27, 2 }
  0x26   : > { %p3267_p4 = por %p202_p0, %p46_p10  ;;  %s1943_s14 = sshll.u32 %s291_s30, 3 }
  0x27   : > { %s1944_s16 = sshll.u32 %s3123_s27, 3  ;;  %s295_s21 = scalar_lea.vmem [#allocation2], %s1943_s14 }
  0x28   : > { %s299_s19 = scalar_lea.hbm %s3390_s0, %s1944_s16  ;;  %s303_s22 = sshll.u32 %s295_s21, 4  ;;  %s304_s22 = int_to_ptr.vmem [resolvable:$true] %s303_s22 }
  0x29   : > { %s301_s20 = sshll.u32 %s299_s19, 4  ;;  %p3276_p8 = pnand %p2814_p6, %p42_p2  ;;  %s302_s20 = int_to_ptr.hbm [resolvable:$true] %s301_s20 }
  0x2a   : > { %s292_s29 = scalar_lea.sflag [#allocation3], %s291_s30  ;;  %s3015_s10 = sshra.s32 %s302_s20, 4  ;;  %s3016_s10 = int_to_ptr.hbm [resolvable:$true] %s3015_s10 }
  0x2b   : > { %s3017_s1 = scalar_lea.hbm %s3016_s10, 8  ;;  %p3019_p9 = pneg %p3276_p8 }
  0x2c   : > { %p3018_p7 = scmp.ne.s32.totalorder %s3016_s10, %s3017_s1  ;;  %s3022_s14 = scalar_lea.hbm %s3390_s0, 16 }
  0x2d   : > { %p3023_p0 = scmp.lt.s32.totalorder %s3016_s10, %s3390_s0  ;;  %p3024_p2 = scmp.lt.s32.totalorder %s3022_s14, %s3017_s1 }
  0x2e   : > { %p3020_p10 = pnand %p3019_p9, %p3018_p7 }
  0x2f   : > { %p3025_p6 = por %p3024_p2, %p3023_p0 }
  0x30   : > { %p3021_p11 = pneg %p3020_p10 }
  0x32   : > { %p3026_p5 = pnand %p3025_p6, %p3021_p11 }
  0x34   : > { %3029 = shalt.err (!%p3026_p5)
}
  0x35   : > { %2804 = dma.hbm_to_vmem [thread:$0]  (!%p3276_p8), %s302_s20, 128, %s304_s22, %s292_s29  }
  0x36   : > { %312 = sbr.rel (%p3205_p3) target bundleno = 558 (0x22e), region = 48  ;;  %s3293_s30 = sand.u32 (!%p3205_p3), 1, %s3115_s25  }
  0x37   : > { %s1946_s21 = sshll.u32 (!%p3205_p3), %s3293_s30, 3  ;;  %s315_s16 = scalar_lea.sflag (!%p3205_p3), [#allocation3], %s3293_s30 }
  0x38   : > { %s3299_s1 = scalar_lea.vmem (!%p3205_p3), [#allocation2], %s1946_s21 }
  0x3b   : > { %3090 = dma.done.wait (%p3258_p12), %s315_s16, 128  }
  0x3c   : > { %3092 = vsyncadd (%p3258_p12), %s315_s16, 4294967168 }
  0x3d   : > { %3094 = dma.done.wait (%p47_p1), [#allocation6], 2112  }
  0x3e   : > { %3096 = vsyncadd (%p47_p1), [#allocation6], 4294965184 }
  0x3f   : > { %3098 = dma.done.wait (%p47_p1), [#allocation9], 16448  }
  0x40   : > { %3100 = vsyncadd (%p47_p1), [#allocation9], 4294950848 }
  0x41   : > { %3102 = dma.done.wait (%p47_p1), [#allocation12], 4096  }
  0x42   : > { %3104 = vsyncadd (%p47_p1), [#allocation12], 4294963200  ;;  %v388_v0 = vld [vmem:[#allocation5 + $0x60] sm:$0xff]  ;;  %v389_v1 = vld [vmem:[#allocation5 + $0x68] sm:$0xff]  ;;  %vm402_vm0 = vcmask 261120   ;;  %s2598_s20 = sshll.u32 %s3200_s8, 3 }
  0x43   : > { %v390_v2 = vld [vmem:[#allocation5 + $0x70] sm:$0xff]  ;;  %418 = vmatpush.msra.mxu0 %v388_v0  ;;  %438 = vmatpush.msra.mxu1 %v389_v1  ;;  %v391_v3 = vld [vmem:[#allocation5 + $0x78] sm:$0xff]  ;;  %v384_v4 = vld [vmem:[#allocation5 + $0x40] sm:$0xff]  ;;  %s1812_s29 = scalar_lea.hbm %s3397_s7, %s2598_s20  ;;  %s374_s10 = scalar_lea.vmem [#allocation13], %s1946_s21 }
  0x44   : > { %v385_v5 = vld [vmem:[#allocation5 + $0x48] sm:$0xff]  ;;  %458 = vmatpush.msra.mxu2 %v390_v2  ;;  %478 = vmatpush.msra.mxu3 %v391_v3  ;;  %v386_v6 = vld [vmem:[#allocation5 + $0x50] sm:$0xff]  ;;  %v387_v7 = vld [vmem:[#allocation5 + $0x58] sm:$0xff]  ;;  %s1814_s17 = sshll.u32 %s374_s10, 4  ;;  %s1816_s14 = sshll.u32 %s1812_s29, 4  ;;  %s1815_s17 = int_to_ptr.vmem [resolvable:$true] %s1814_s17  ;;  %s1817_s14 = int_to_ptr.hbm [resolvable:$true] %s1816_s14 }
  0x45   : > { %v380_v8 = vld [vmem:[#allocation5 + $0x20] sm:$0xff]  ;;  %419 = vmatpush.msra.mxu0 %v384_v4  ;;  %439 = vmatpush.msra.mxu1 %v385_v5  ;;  %v381_v9 = vld [vmem:[#allocation5 + $0x28] sm:$0xff]  ;;  %v382_v10 = vld [vmem:[#allocation5 + $0x30] sm:$0xff]  ;;  %s1802_s18 = scalar_lea.sflag [#allocation4], %s3293_s30  ;;  %s3059_s19 = sshra.s32 %s1817_s14, 4  ;;  %s3060_s19 = int_to_ptr.hbm [resolvable:$true] %s3059_s19 }
  0x46   : > { %v383_v11 = vld [vmem:[#allocation5 + $0x38] sm:$0xff]  ;;  %459 = vmatpush.msra.mxu2 %v386_v6  ;;  %479 = vmatpush.msra.mxu3 %v387_v7  ;;  %v376_v12 = vld [vmem:[#allocation5] sm:$0xff]  ;;  %v377_v13 = vld [vmem:[#allocation5 + $0x8] sm:$0xff]  ;;  %s3061_s8 = scalar_lea.hbm %s3060_s19, 8  ;;  %s3065_s21 = scalar_lea.hbm %s3397_s7, 16 }
  0x47   : > { %v378_v14 = vld [vmem:[#allocation5 + $0x10] sm:$0xff]  ;;  %420 = vmatpush.msra.mxu0 %v380_v8  ;;  %440 = vmatpush.msra.mxu1 %v381_v9  ;;  %v379_v15 = vld [vmem:[#allocation5 + $0x18] sm:$0xff]  ;;  %v2071_v17 = vld [vmem:[#allocation8 + $0xe0] sm:$0xf]  ;;  %p3062_p1 = scmp.ne.s32.totalorder %s3060_s19, %s3061_s8  ;;  %p3066_p12 = scmp.lt.s32.totalorder %s3060_s19, %s3397_s7 }
  0x48   : > { %v375_v16 = vld [vmem:[%s3299_s1] sm:$0xff]  ;;  %460 = vmatpush.msra.mxu2 %v382_v10  ;;  %480 = vmatpush.msra.mxu3 %v383_v11  ;;  %v2199_v19 = vld [vmem:[#allocation8 + $0x1e0] sm:$0xf]  ;;  %p3067_p8 = scmp.lt.s32.totalorder %s3065_s21, %s3061_s8 }
  0x49   : > { %v2631_v18 = vld [vmem:[#allocation8 + $0xec] sm:$0xf0]  ;;  %421 = vmatpush.msra.mxu0 %v376_v12  ;;  %441 = vmatpush.msra.mxu1 %v377_v13  ;;  %v2055_v23 = vld [vmem:[#allocation8 + $0xc0] sm:$0xf]  ;;  %p3063_p3 = pnand %p3062_p1, %p3262_p13 }
  0x4a   : > { %v2663_v20 = vld [vmem:[#allocation8 + $0x1ec] sm:$0xf0]  ;;  %v2072_v21 = vor.u32 %v2631_v18, %v2071_v17  ;;  %v2183_v25 = vld [vmem:[#allocation8 + $0x1c0] sm:$0xf]  ;;  %461 = vmatpush.msra.mxu2 %v378_v14  ;;  %481 = vmatpush.msra.mxu3 %v379_v15  ;;  %p3068_p7 = por %p3067_p8, %p3066_p12 }
  0x4b   : > { %v2200_v22 = vor.u32 %v2663_v20, %v2199_v19  ;;  %v2627_v24 = vld [vmem:[#allocation8 + $0xcc] sm:$0xf0]  ;;  %v2327_v27 = vld [vmem:[#allocation8 + $0x2e0] sm:$0xf]  ;;  %1953 = vmatmul.msk.f32.vlgmr.msra.gmra.mxu0 %vm402_vm0, %v375_v16  ;;  %1954 = vmatmul.msk.f32.vlgmr.msra.gmra.mxu1 %vm402_vm0, %v375_v16  ;;  %p3064_p5 = pneg %p3063_p3 }
  0x4c   : > { %v2659_v26 = vld [vmem:[#allocation8 + $0x1cc] sm:$0xf0]  ;;  %v2455_v30 = vld [vmem:[#allocation8 + $0x3e0] sm:$0xf]  ;;  %1955 = vmatmul.msk.f32.vlgmr.msra.gmra.mxu2 %vm402_vm0, %v375_v16  ;;  %1956 = vmatmul.msk.f32.vlgmr.msra.gmra.mxu3 %vm402_vm0, %v375_v16  ;;  %v2056_v35 = vor.u32 %v2627_v24, %v2055_v23 }
  0x4d   : > { %v2695_v28 = vld [vmem:[#allocation8 + $0x2ec] sm:$0xf0]  ;;  %v2039_v33 = vld [vmem:[#allocation8 + $0xa0] sm:$0xf]  ;;  %1272 = vmatpush.bf16.msrb.mxu0 %v2072_v21  ;;  %1285 = vmatpush.bf16.msrb.mxu1 %v2200_v22  ;;  %v2184_v36 = vor.u32 %v2659_v26, %v2183_v25  ;;  %p3069_p9 = pnand %p3068_p7, %p3064_p5 }
  0x4e   : > { %v2328_v29 = vor.u32 %v2695_v28, %v2327_v27  ;;  %v2727_v31 = vld [vmem:[#allocation8 + $0x3ec] sm:$0xf0]  ;;  %v2311_v37 = vld [vmem:[#allocation8 + $0x2c0] sm:$0xf] }
  0x4f   : > { %v2456_v32 = vor.u32 %v2727_v31, %v2455_v30  ;;  %v2623_v34 = vld [vmem:[#allocation8 + $0xac] sm:$0xf0]  ;;  %v2439_v39 = vld [vmem:[#allocation8 + $0x3c0] sm:$0xf] }
  0x50   : > { %v2691_v38 = vld [vmem:[#allocation8 + $0x2cc] sm:$0xf0]  ;;  %1298 = vmatpush.bf16.msrb.mxu2 %v2328_v29  ;;  %v2167_v40 = vld [vmem:[#allocation8 + $0x1a0] sm:$0xf]  ;;  %v2040_v49 = vor.u32 %v2623_v34, %v2039_v33 }
  0x51   : > { %1311 = vmatpush.bf16.msrb.mxu3 %v2456_v32  ;;  %v2655_v41 = vld [vmem:[#allocation8 + $0x1ac] sm:$0xf0]  ;;  %v2312_v42 = vor.u32 %v2691_v38, %v2311_v37  ;;  %v2295_v45 = vld [vmem:[#allocation8 + $0x2a0] sm:$0xf]  ;;  %1273 = vmatpush.bf16.msrb.mxu0 %v2056_v35 }
  0x52   : > { %v2723_v43 = vld [vmem:[#allocation8 + $0x3cc] sm:$0xf0]  ;;  %v2423_v47 = vld [vmem:[#allocation8 + $0x3a0] sm:$0xf]  ;;  %1286 = vmatpush.bf16.msrb.mxu1 %v2184_v36  ;;  %v2168_v50 = vor.u32 %v2655_v41, %v2167_v40  ;;  %v2073_v40 = vld [vmem:[#allocation8 + $0xf0] sm:$0xf0] }
  0x53   : > { %v2440_v44 = vor.u32 %v2723_v43, %v2439_v39  ;;  %v2687_v46 = vld [vmem:[#allocation8 + $0x2ac] sm:$0xf0]  ;;  %v2023_v51 = vld [vmem:[#allocation8 + $0x80] sm:$0xf]  ;;  %v2629_v39 = vld [vmem:[#allocation8 + $0xe4] sm:$0xf] }
  0x54   : > { %v2719_v48 = vld [vmem:[#allocation8 + $0x3ac] sm:$0xf0]  ;;  %1299 = vmatpush.bf16.msrb.mxu2 %v2312_v42  ;;  %v2151_v53 = vld [vmem:[#allocation8 + $0x180] sm:$0xf]  ;;  %v2296_v55 = vor.u32 %v2687_v46, %v2295_v45  ;;  %v2661_v41 = vld [vmem:[#allocation8 + $0x1e4] sm:$0xf] }
  0x55   : > { %v2619_v52 = vld [vmem:[#allocation8 + $0x8c] sm:$0xf0]  ;;  %1312 = vmatpush.bf16.msrb.mxu3 %v2440_v44  ;;  %v2424_v56 = vor.u32 %v2719_v48, %v2423_v47  ;;  %v2279_v57 = vld [vmem:[#allocation8 + $0x280] sm:$0xf]  ;;  %1274 = vmatpush.bf16.msrb.mxu0 %v2040_v49  ;;  %v2201_v44 = vld [vmem:[#allocation8 + $0x1f0] sm:$0xf0] }
  0x56   : > { %v2651_v54 = vld [vmem:[#allocation8 + $0x18c] sm:$0xf0]  ;;  %v2407_v59 = vld [vmem:[#allocation8 + $0x380] sm:$0xf]  ;;  %1287 = vmatpush.bf16.msrb.mxu1 %v2168_v50  ;;  %v2024_v61 = vor.u32 %v2619_v52, %v2023_v51  ;;  %v2693_v49 = vld [vmem:[#allocation8 + $0x2e4] sm:$0xf] }
  0x57   : > { %v2683_v58 = vld [vmem:[#allocation8 + $0x28c] sm:$0xf0]  ;;  %v2152_v62 = vor.u32 %v2651_v54, %v2151_v53  ;;  %v2007_v63 = vld [vmem:[#allocation8 + $0x60] sm:$0xf]  ;;  %v2329_v52 = vld [vmem:[#allocation8 + $0x2f0] sm:$0xf0] }
  0x58   : > { %v2715_v60 = vld [vmem:[#allocation8 + $0x38c] sm:$0xf0]  ;;  %1300 = vmatpush.bf16.msrb.mxu2 %v2296_v55  ;;  %v2135_v1 = vld [vmem:[#allocation8 + $0x160] sm:$0xf]  ;;  %v2280_v3 = vor.u32 %v2683_v58, %v2279_v57  ;;  %v2725_v53 = vld [vmem:[#allocation8 + $0x3e4] sm:$0xf]  ;;  %v2076_v55 = vor.u32 %v2629_v39, %v2073_v40 }
  0x59   : > { %v2615_v0 = vld [vmem:[#allocation8 + $0x6c] sm:$0xf0]  ;;  %1313 = vmatpush.bf16.msrb.mxu3 %v2424_v56  ;;  %v2408_v4 = vor.u32 %v2715_v60, %v2407_v59  ;;  %v2263_v5 = vld [vmem:[#allocation8 + $0x260] sm:$0xf]  ;;  %1275 = vmatpush.bf16.msrb.mxu0 %v2024_v61  ;;  %v2457_v54 = vld [vmem:[#allocation8 + $0x3f0] sm:$0xf0]  ;;  %v2204_v56 = vor.u32 %v2661_v41, %v2201_v44 }
  0x5a   : > { %v2647_v2 = vld [vmem:[#allocation8 + $0x16c] sm:$0xf0]  ;;  %v2391_v7 = vld [vmem:[#allocation8 + $0x360] sm:$0xf]  ;;  %1288 = vmatpush.bf16.msrb.mxu1 %v2152_v62  ;;  %v2008_v9 = vor.u32 %v2615_v0, %v2007_v63  ;;  %v2625_v57 = vld [vmem:[#allocation8 + $0xc4] sm:$0xf]  ;;  %v2332_v63 = vor.u32 %v2693_v49, %v2329_v52  ;;  %v2460_v0 = vor.u32 %v2725_v53, %v2457_v54 }
  0x5b   : > { %v2679_v6 = vld [vmem:[#allocation8 + $0x26c] sm:$0xf0]  ;;  %v2136_v10 = vor.u32 %v2647_v2, %v2135_v1  ;;  %v1991_v11 = vld [vmem:[#allocation8 + $0x40] sm:$0xf]  ;;  %v2057_v58 = vld [vmem:[#allocation8 + $0xd0] sm:$0xf0] }
  0x5c   : > { %v2711_v8 = vld [vmem:[#allocation8 + $0x36c] sm:$0xf0]  ;;  %1301 = vmatpush.bf16.msrb.mxu2 %v2280_v3  ;;  %v2119_v13 = vld [vmem:[#allocation8 + $0x140] sm:$0xf]  ;;  %v2264_v15 = vor.u32 %v2679_v6, %v2263_v5  ;;  %v2657_v59 = vld [vmem:[#allocation8 + $0x1c4] sm:$0xf]  ;;  %v2060_v5 = vor.u32 %v2625_v57, %v2057_v58 }
  0x5d   : > { %v2611_v12 = vld [vmem:[#allocation8 + $0x4c] sm:$0xf0]  ;;  %1314 = vmatpush.bf16.msrb.mxu3 %v2408_v4  ;;  %v2392_v16 = vor.u32 %v2711_v8, %v2391_v7  ;;  %v2247_v17 = vld [vmem:[#allocation8 + $0x240] sm:$0xf]  ;;  %1276 = vmatpush.bf16.msrb.mxu0 %v2008_v9  ;;  %v2185_v60 = vld [vmem:[#allocation8 + $0x1d0] sm:$0xf0] }
  0x5e   : > { %v2643_v14 = vld [vmem:[#allocation8 + $0x14c] sm:$0xf0]  ;;  %v2375_v19 = vld [vmem:[#allocation8 + $0x340] sm:$0xf]  ;;  %1289 = vmatpush.bf16.msrb.mxu1 %v2136_v10  ;;  %v1992_v21 = vor.u32 %v2611_v12, %v1991_v11  ;;  %v2689_v1 = vld [vmem:[#allocation8 + $0x2c4] sm:$0xf]  ;;  %v2188_v6 = vor.u32 %v2657_v59, %v2185_v60 }
  0x5f   : > { %v2675_v18 = vld [vmem:[#allocation8 + $0x24c] sm:$0xf0]  ;;  %v2120_v22 = vor.u32 %v2643_v14, %v2119_v13  ;;  %v1975_v23 = vld [vmem:[#allocation8 + $0x20] sm:$0xf]  ;;  %v2313_v2 = vld [vmem:[#allocation8 + $0x2d0] sm:$0xf0] }
  0x60   : > { %v2707_v20 = vld [vmem:[#allocation8 + $0x34c] sm:$0xf0]  ;;  %1302 = vmatpush.bf16.msrb.mxu2 %v2264_v15  ;;  %v2103_v25 = vld [vmem:[#allocation8 + $0x120] sm:$0xf]  ;;  %v2248_v27 = vor.u32 %v2675_v18, %v2247_v17  ;;  %v2721_v3 = vld [vmem:[#allocation8 + $0x3c4] sm:$0xf]  ;;  %v2316_v11 = vor.u32 %v2689_v1, %v2313_v2 }
  0x61   : > { %v2607_v24 = vld [vmem:[#allocation8 + $0x2c] sm:$0xf0]  ;;  %1315 = vmatpush.bf16.msrb.mxu3 %v2392_v16  ;;  %v2376_v28 = vor.u32 %v2707_v20, %v2375_v19  ;;  %v2231_v29 = vld [vmem:[#allocation8 + $0x220] sm:$0xf]  ;;  %1277 = vmatpush.bf16.msrb.mxu0 %v1992_v21  ;;  %v2441_v4 = vld [vmem:[#allocation8 + $0x3d0] sm:$0xf0] }
  0x62   : > { %v2639_v26 = vld [vmem:[#allocation8 + $0x12c] sm:$0xf0]  ;;  %v2359_v31 = vld [vmem:[#allocation8 + $0x320] sm:$0xf]  ;;  %1290 = vmatpush.bf16.msrb.mxu1 %v2120_v22  ;;  %v1976_v34 = vor.u32 %v2607_v24, %v1975_v23  ;;  %v2621_v7 = vld [vmem:[#allocation8 + $0xa4] sm:$0xf]  ;;  %v2444_v12 = vor.u32 %v2721_v3, %v2441_v4 }
  0x63   : > { %v2671_v30 = vld [vmem:[#allocation8 + $0x22c] sm:$0xf0]  ;;  %v1959_v33 = vld [vmem:[#allocation8] sm:$0xf]  ;;  %v2104_v35 = vor.u32 %v2639_v26, %v2103_v25  ;;  %v2041_v8 = vld [vmem:[#allocation8 + $0xb0] sm:$0xf0] }
  0x64   : > { %v2703_v32 = vld [vmem:[#allocation8 + $0x32c] sm:$0xf0]  ;;  %v2087_v37 = vld [vmem:[#allocation8 + $0x100] sm:$0xf]  ;;  %1303 = vmatpush.bf16.msrb.mxu2 %v2248_v27  ;;  %v2232_v42 = vor.u32 %v2671_v30, %v2231_v29  ;;  %v2653_v9 = vld [vmem:[#allocation8 + $0x1a4] sm:$0xf]  ;;  %v2044_v17 = vor.u32 %v2621_v7, %v2041_v8 }
  0x65   : > { %v2603_v36 = vld [vmem:[#allocation8 + $0xc] sm:$0xf0]  ;;  %1316 = vmatpush.bf16.msrb.mxu3 %v2376_v28  ;;  %v2360_v43 = vor.u32 %v2703_v32, %v2359_v31  ;;  %v2215_v45 = vld [vmem:[#allocation8 + $0x200] sm:$0xf]  ;;  %1278 = vmatpush.bf16.msrb.mxu0 %v1976_v34  ;;  %v2169_v10 = vld [vmem:[#allocation8 + $0x1b0] sm:$0xf0] }
  0x66   : > { %v2635_v38 = vld [vmem:[#allocation8 + $0x10c] sm:$0xf0]  ;;  %v2343_v47 = vld [vmem:[#allocation8 + $0x300] sm:$0xf]  ;;  %1291 = vmatpush.bf16.msrb.mxu1 %v2104_v35  ;;  %v1960_v50 = vor.u32 %v2603_v36, %v1959_v33  ;;  %v2685_v13 = vld [vmem:[#allocation8 + $0x2a4] sm:$0xf]  ;;  %v2172_v18 = vor.u32 %v2653_v9, %v2169_v10 }
  0x67   : > { %v2667_v46 = vld [vmem:[#allocation8 + $0x20c] sm:$0xf0]  ;;  %v2088_v51 = vor.u32 %v2635_v38, %v2087_v37  ;;  %v2297_v14 = vld [vmem:[#allocation8 + $0x2b0] sm:$0xf0]  ;;  %v2717_v15 = vld [vmem:[#allocation8 + $0x3a4] sm:$0xf] }
  0x68   : > { %v2699_v48 = vld [vmem:[#allocation8 + $0x30c] sm:$0xf0]  ;;  %1304 = vmatpush.bf16.msrb.mxu2 %v2232_v42  ;;  %v2216_v61 = vor.u32 %v2667_v46, %v2215_v45  ;;  %v2425_v16 = vld [vmem:[#allocation8 + $0x3b0] sm:$0xf0]  ;;  %v2617_v19 = vld [vmem:[#allocation8 + $0x84] sm:$0xf]  ;;  %v2300_v23 = vor.u32 %v2685_v13, %v2297_v14 }
  0x69   : > { %1317 = vmatpush.bf16.msrb.mxu3 %v2360_v43  ;;  %v2344_v62 = vor.u32 %v2699_v48, %v2343_v47  ;;  %1279 = vmatpush.bf16.msrb.mxu0 %v1960_v50  ;;  %v2025_v20 = vld [vmem:[#allocation8 + $0x90] sm:$0xf0]  ;;  %v2649_v21 = vld [vmem:[#allocation8 + $0x184] sm:$0xf]  ;;  %v2428_v24 = vor.u32 %v2717_v15, %v2425_v16 }
  0x6a   : > { %1292 = vmatpush.bf16.msrb.mxu1 %v2088_v51  ;;  %v2153_v22 = vld [vmem:[#allocation8 + $0x190] sm:$0xf0]  ;;  %v2681_v25 = vld [vmem:[#allocation8 + $0x284] sm:$0xf]  ;;  %v2028_v29 = vor.u32 %v2617_v19, %v2025_v20 }
  0x6b   : > { %v2281_v26 = vld [vmem:[#allocation8 + $0x290] sm:$0xf0]  ;;  %v2713_v27 = vld [vmem:[#allocation8 + $0x384] sm:$0xf]  ;;  %v2156_v30 = vor.u32 %v2649_v21, %v2153_v22  ;;  %v2079_v22 = vld [vmem:[#allocation8 + $0xe8] sm:$0xf] }
  0x6c   : > { %1305 = vmatpush.bf16.msrb.mxu2 %v2216_v61  ;;  %v2409_v28 = vld [vmem:[#allocation8 + $0x390] sm:$0xf0]  ;;  %v2613_v31 = vld [vmem:[#allocation8 + $0x64] sm:$0xf]  ;;  %v2284_v35 = vor.u32 %v2681_v25, %v2281_v26  ;;  %v2632_v25 = vld [vmem:[#allocation8 + $0xf4] sm:$0xf0] }
  0x6d   : > { %1324 = vmatpush.bf16.msra.mxu0 %v2076_v55  ;;  %1318 = vmatpush.bf16.msrb.mxu3 %v2344_v62  ;;  %v2009_v32 = vld [vmem:[#allocation8 + $0x70] sm:$0xf0]  ;;  %v2645_v33 = vld [vmem:[#allocation8 + $0x164] sm:$0xf]  ;;  %v2412_v36 = vor.u32 %v2713_v27, %v2409_v28  ;;  %v2207_v26 = vld [vmem:[#allocation8 + $0x1e8] sm:$0xf] }
  0x6e   : > { %1337 = vmatpush.bf16.msra.mxu1 %v2204_v56  ;;  %v2137_v34 = vld [vmem:[#allocation8 + $0x170] sm:$0xf0]  ;;  %v2012_v37 = vor.u32 %v2613_v31, %v2009_v32  ;;  %v2609_v39 = vld [vmem:[#allocation8 + $0x44] sm:$0xf]  ;;  %v2664_v27 = vld [vmem:[#allocation8 + $0x1f4] sm:$0xf0]  ;;  %v2080_v32 = vor.u32 %v2632_v25, %v2079_v22 }
  0x6f   : > { %v2140_v38 = vor.u32 %v2645_v33, %v2137_v34  ;;  %v1993_v40 = vld [vmem:[#allocation8 + $0x50] sm:$0xf0]  ;;  %v2641_v41 = vld [vmem:[#allocation8 + $0x144] sm:$0xf]  ;;  %v2208_v33 = vor.u32 %v2664_v27, %v2207_v26  ;;  %v2063_v34 = vld [vmem:[#allocation8 + $0xc8] sm:$0xf] }
  0x70   : > { %1350 = vmatpush.bf16.msra.mxu2 %v2332_v63  ;;  %v2121_v42 = vld [vmem:[#allocation8 + $0x150] sm:$0xf0]  ;;  %v1996_v43 = vor.u32 %v2609_v39, %v1993_v40  ;;  %v2677_v45 = vld [vmem:[#allocation8 + $0x264] sm:$0xf]  ;;  %v2660_v39 = vld [vmem:[#allocation8 + $0x1d4] sm:$0xf0] }
  0x71   : > { %1363 = vmatpush.bf16.msra.mxu3 %v2460_v0  ;;  %1325 = vmatpush.bf16.msra.mxu0 %v2060_v5  ;;  %v2124_v44 = vor.u32 %v2641_v41, %v2121_v42  ;;  %v2265_v46 = vld [vmem:[#allocation8 + $0x270] sm:$0xf0]  ;;  %v2709_v47 = vld [vmem:[#allocation8 + $0x364] sm:$0xf]  ;;  %v2415_v22 = vld [vmem:[#allocation8 + $0x388] sm:$0xf] }
  0x72   : > { %1338 = vmatpush.bf16.msra.mxu1 %v2188_v6  ;;  %v2268_v48 = vor.u32 %v2677_v45, %v2265_v46  ;;  %v2393_v49 = vld [vmem:[#allocation8 + $0x370] sm:$0xf0]  ;;  %v2605_v51 = vld [vmem:[#allocation8 + $0x24] sm:$0xf]  ;;  %v2463_v45 = vld [vmem:[#allocation8 + $0x3e8] sm:$0xf] }
  0x73   : > { %v2396_v50 = vor.u32 %v2709_v47, %v2393_v49  ;;  %v1977_v52 = vld [vmem:[#allocation8 + $0x30] sm:$0xf0]  ;;  %v2637_v54 = vld [vmem:[#allocation8 + $0x124] sm:$0xf]  ;;  %v2728_v49 = vld [vmem:[#allocation8 + $0x3f4] sm:$0xf0] }
  0x74   : > { %1351 = vmatpush.bf16.msra.mxu2 %v2316_v11  ;;  %v1980_v53 = vor.u32 %v2605_v51, %v1977_v52  ;;  %v2105_v55 = vld [vmem:[#allocation8 + $0x130] sm:$0xf0]  ;;  %v2673_v57 = vld [vmem:[#allocation8 + $0x244] sm:$0xf]  ;;  %v2624_v51 = vld [vmem:[#allocation8 + $0xb4] sm:$0xf0] }
  0x75   : > { %1364 = vmatpush.bf16.msra.mxu3 %v2444_v12  ;;  %1326 = vmatpush.bf16.msra.mxu0 %v2044_v17  ;;  %v2108_v56 = vor.u32 %v2637_v54, %v2105_v55  ;;  %v2249_v58 = vld [vmem:[#allocation8 + $0x250] sm:$0xf0]  ;;  %v2705_v59 = vld [vmem:[#allocation8 + $0x344] sm:$0xf]  ;;  %v392_v17 = vld [vmem:[#allocation7] sm:$0xf] }
  0x76   : > { %1339 = vmatpush.bf16.msra.mxu1 %v2172_v18  ;;  %v2252_v60 = vor.u32 %v2673_v57, %v2249_v58  ;;  %v2377_v61 = vld [vmem:[#allocation8 + $0x350] sm:$0xf0]  ;;  %v2601_v63 = vld [vmem:[#allocation8 + $0x4] sm:$0xf]  ;;  %v394_v18 = vperm.slane %v392_v17, 0  ;;  %v395_v19 = vperm.slane %v392_v17, 1  ;;  %v2464_v57 = vor.u32 %v2728_v49, %v2463_v45 }
  0x77   : > { %v2380_v62 = vor.u32 %v2705_v59, %v2377_v61  ;;  %v1961_v0 = vld [vmem:[#allocation8 + $0x10] sm:$0xf0]  ;;  %v2633_v1 = vld [vmem:[#allocation8 + $0x104] sm:$0xf]  ;;  %v397_v31 = vperm.slane %v392_v17, 3 }
  0x78   : > { %1352 = vmatpush.bf16.msra.mxu2 %v2300_v23  ;;  %v1964_v2 = vor.u32 %v2601_v63, %v1961_v0  ;;  %v2089_v3 = vld [vmem:[#allocation8 + $0x110] sm:$0xf0]  ;;  %v2669_v5 = vld [vmem:[#allocation8 + $0x224] sm:$0xf]  ;;  %v2175_v52 = vld [vmem:[#allocation8 + $0x1a8] sm:$0xf] }
  0x79   : > { %1365 = vmatpush.bf16.msra.mxu3 %v2428_v24  ;;  %1327 = vmatpush.bf16.msra.mxu0 %v2028_v29  ;;  %v2092_v4 = vor.u32 %v2633_v1, %v2089_v3  ;;  %v2233_v6 = vld [vmem:[#allocation8 + $0x230] sm:$0xf0]  ;;  %v2701_v8 = vld [vmem:[#allocation8 + $0x324] sm:$0xf]  ;;  %v2319_v59 = vld [vmem:[#allocation8 + $0x2c8] sm:$0xf] }
  0x7a   : > { %1340 = vmatpush.bf16.msra.mxu1 %v2156_v30  ;;  %v2236_v7 = vor.u32 %v2669_v5, %v2233_v6  ;;  %v2361_v9 = vld [vmem:[#allocation8 + $0x330] sm:$0xf0]  ;;  %v2665_v11 = vld [vmem:[#allocation8 + $0x204] sm:$0xf]  ;;  %v396_v30 = vperm.slane %v392_v17, 2 }
  0x7b   : > { %v2364_v10 = vor.u32 %v2701_v8, %v2361_v9  ;;  %v2217_v12 = vld [vmem:[#allocation8 + $0x210] sm:$0xf0]  ;;  %v2697_v14 = vld [vmem:[#allocation8 + $0x304] sm:$0xf]  ;;  %v2447_v0 = vld [vmem:[#allocation8 + $0x3c8] sm:$0xf] }
  0x7c   : > { %1353 = vmatpush.bf16.msra.mxu2 %v2284_v35  ;;  %v2220_v13 = vor.u32 %v2665_v11, %v2217_v12  ;;  %v2345_v15 = vld [vmem:[#allocation8 + $0x310] sm:$0xf0]  ;;  %v2628_v35 = vld [vmem:[#allocation8 + $0xd4] sm:$0xf0]  ;;  %v2303_v8 = vld [vmem:[#allocation8 + $0x2a8] sm:$0xf] }
  0x7d   : > { %1366 = vmatpush.bf16.msra.mxu3 %v2412_v36  ;;  %1328 = vmatpush.bf16.msra.mxu0 %v2012_v37  ;;  %v2348_v16 = vor.u32 %v2697_v14, %v2345_v15  ;;  %v2064_v42 = vor.u32 %v2628_v35, %v2063_v34  ;;  %v2724_v1 = vld [vmem:[#allocation8 + $0x3d4] sm:$0xf0]  ;;  %v2431_v12 = vld [vmem:[#allocation8 + $0x3a8] sm:$0xf] }
  0x7e   : > { %1341 = vmatpush.bf16.msra.mxu1 %v2140_v38  ;;  %v2191_v38 = vld [vmem:[#allocation8 + $0x1c8] sm:$0xf]  ;;  %v2620_v3 = vld [vmem:[#allocation8 + $0x94] sm:$0xf0] }
  0x7f   : > { %v2652_v5 = vld [vmem:[#allocation8 + $0x194] sm:$0xf0]  ;;  %v2015_v14 = vld [vmem:[#allocation8 + $0x68] sm:$0xf] }
  0x80   : > { %1354 = vmatpush.bf16.msra.mxu2 %v2268_v48  ;;  %v2192_v48 = vor.u32 %v2660_v39, %v2191_v38  ;;  %v2688_v11 = vld [vmem:[#allocation8 + $0x2b4] sm:$0xf0]  ;;  %v1999_v26 = vld [vmem:[#allocation8 + $0x48] sm:$0xf] }
  0x81   : > { %1329 = vmatpush.bf16.msra.mxu0 %v1996_v43  ;;  %1367 = vmatpush.bf16.msra.mxu3 %v2396_v50  ;;  %v2335_v43 = vld [vmem:[#allocation8 + $0x2e8] sm:$0xf]  ;;  %v2616_v15 = vld [vmem:[#allocation8 + $0x74] sm:$0xf0] }
  0x82   : > { %1342 = vmatpush.bf16.msra.mxu1 %v2124_v44  ;;  %v2696_v44 = vld [vmem:[#allocation8 + $0x2f4] sm:$0xf0]  ;;  %v2047_v50 = vld [vmem:[#allocation8 + $0xa8] sm:$0xf] }
  0x83   : > { %v2048_v58 = vor.u32 %v2624_v51, %v2047_v50  ;;  %v2648_v17 = vld [vmem:[#allocation8 + $0x174] sm:$0xf0]  ;;  %v2399_v34 = vld [vmem:[#allocation8 + $0x368] sm:$0xf] }
  0x84   : > { %1355 = vmatpush.bf16.msra.mxu2 %v2252_v60  ;;  %v2692_v60 = vld [vmem:[#allocation8 + $0x2d4] sm:$0xf0] }
  0x85   : > { %1330 = vmatpush.bf16.msra.mxu0 %v1980_v53  ;;  %1368 = vmatpush.bf16.msra.mxu3 %v2380_v62  ;;  %v2656_v53 = vld [vmem:[#allocation8 + $0x1b4] sm:$0xf0]  ;;  %v2320_v6 = vor.u32 %v2692_v60, %v2319_v59  ;;  %v2662_v60 = vld [vmem:[#allocation8 + $0x1ec] sm:$0xf] }
  0x86   : > { %1343 = vmatpush.bf16.msra.mxu1 %v2108_v56  ;;  %v2336_v56 = vor.u32 %v2696_v44, %v2335_v43  ;;  %v2176_v63 = vor.u32 %v2656_v53, %v2175_v52  ;;  %v2612_v27 = vld [vmem:[#allocation8 + $0x54] sm:$0xf0]  ;;  %v1967_v52 = vld [vmem:[#allocation8 + $0x8] sm:$0xf] }
  0x87   : > { %v2712_v35 = vld [vmem:[#allocation8 + $0x374] sm:$0xf0]  ;;  %v2000_v38 = vor.u32 %v2612_v27, %v1999_v26  ;;  %v2049_v27 = vld [vmem:[#allocation8 + $0xb8] sm:$0xf0] }
  0x88   : > { %1356 = vmatpush.bf16.msra.mxu2 %v2236_v7  ;;  %v2448_v7 = vor.u32 %v2724_v1, %v2447_v0  ;;  %v2640_v43 = vld [vmem:[#allocation8 + $0x134] sm:$0xf0]  ;;  %v2400_v45 = vor.u32 %v2712_v35, %v2399_v34  ;;  %v2239_v0 = vld [vmem:[#allocation8 + $0x228] sm:$0xf]  ;;  %v2722_v34 = vld [vmem:[#allocation8 + $0x3cc] sm:$0xf] }
  0x89   : > { %1331 = vmatpush.bf16.msra.mxu0 %v1964_v2  ;;  %1369 = vmatpush.bf16.msra.mxu3 %v2364_v10  ;;  %v2031_v2 = vld [vmem:[#allocation8 + $0x88] sm:$0xf]  ;;  %v2708_v49 = vld [vmem:[#allocation8 + $0x354] sm:$0xf0]  ;;  %v2449_v35 = vld [vmem:[#allocation8 + $0x3d8] sm:$0xf0] }
  0x8a   : > { %1344 = vmatpush.bf16.msra.mxu1 %v2092_v4  ;;  %v2159_v4 = vld [vmem:[#allocation8 + $0x188] sm:$0xf]  ;;  %v2032_v9 = vor.u32 %v2620_v3, %v2031_v2  ;;  %v2604_v53 = vld [vmem:[#allocation8 + $0x14] sm:$0xf0] }
  0x8b   : > { %v2160_v10 = vor.u32 %v2652_v5, %v2159_v4  ;;  %v2672_v1 = vld [vmem:[#allocation8 + $0x234] sm:$0xf0]  ;;  %v2367_v2 = vld [vmem:[#allocation8 + $0x328] sm:$0xf]  ;;  %v1968_v4 = vor.u32 %v2604_v53, %v1967_v52  ;;  %v2614_v52 = vld [vmem:[#allocation8 + $0x6c] sm:$0xf] }
  0x8c   : > { %1357 = vmatpush.bf16.msra.mxu2 %v2220_v13  ;;  %v2720_v13 = vld [vmem:[#allocation8 + $0x3b4] sm:$0xf0]  ;;  %v2017_v53 = vld [vmem:[#allocation8 + $0x78] sm:$0xf0] }
  0x8d   : > { %1370 = vmatpush.bf16.msra.mxu3 %v2348_v16  ;;  %v2143_v16 = vld [vmem:[#allocation8 + $0x168] sm:$0xf]  ;;  %v2704_v3 = vld [vmem:[#allocation8 + $0x334] sm:$0xf0] }
  0x8e   : > { %v2144_v25 = vor.u32 %v2648_v17, %v2143_v16  ;;  %v2351_v16 = vld [vmem:[#allocation8 + $0x308] sm:$0xf]  ;;  %v2700_v17 = vld [vmem:[#allocation8 + $0x314] sm:$0xf0] }
  0x8f   : > { %v2352_v26 = vor.u32 %v2700_v17, %v2351_v16  ;;  %v2638_v16 = vld [vmem:[#allocation8 + $0x12c] sm:$0xf]  ;;  %v2113_v17 = vld [vmem:[#allocation8 + $0x138] sm:$0xf0] }
  0xc8   : > { %v423_v20 = vpop.f32.mrf.mxu0  ;;  %v443_v21 = vpop.f32.mrf.mxu1 }
  0xc9   : > { %v424_v23 = vadd.f32 %v423_v20, %v394_v18  ;;  %v444_v24 = vadd.f32 %v443_v21, %v395_v19  ;;  %v2304_v18 = vor.u32 %v2688_v11, %v2303_v8  ;;  %v2432_v19 = vor.u32 %v2720_v13, %v2431_v12  ;;  %v2287_v20 = vld [vmem:[#allocation8 + $0x288] sm:$0xf]  ;;  %v2684_v21 = vld [vmem:[#allocation8 + $0x294] sm:$0xf0]  ;;  %v2626_v8 = vld [vmem:[#allocation8 + $0xcc] sm:$0xf] }
  0xca   : > { %v2240_v11 = vor.u32 %v2672_v1, %v2239_v0  ;;  %v2368_v12 = vor.u32 %v2704_v3, %v2367_v2  ;;  %v2193_v13 = vld [vmem:[#allocation8 + $0x1d8] sm:$0xf0]  ;;  %v2020_v0 = vor.u32 %v2614_v52, %v2017_v53  ;;  %v2610_v2 = vld [vmem:[#allocation8 + $0x4c] sm:$0xf] }
  0xcb   : > { %v486_v28 = vmax.f32 %v424_v23, 0.0  ;;  %v487_v29 = vmax.f32 %v444_v24, 0.0  ;;  %v2716_v23 = vld [vmem:[#allocation8 + $0x394] sm:$0xf0]  ;;  %v2016_v24 = vor.u32 %v2616_v15, %v2015_v14  ;;  %v2223_v14 = vld [vmem:[#allocation8 + $0x208] sm:$0xf] }
  0xcc   : > { %v2668_v15 = vld [vmem:[#allocation8 + $0x214] sm:$0xf0]  ;;  %v2001_v3 = vld [vmem:[#allocation8 + $0x58] sm:$0xf0] }
  0xcd   : > { %v3322_v36 = vpack.c.bf16 %v486_v28, %v486_v28  ;;  %v3324_v37 = vpack.c.bf16 %v487_v29, %v487_v29  ;;  %v2127_v28 = vld [vmem:[#allocation8 + $0x148] sm:$0xf]  ;;  %v2644_v29 = vld [vmem:[#allocation8 + $0x154] sm:$0xf0]  ;;  %v2744_v52 = vld [vmem:[#allocation11 + $0x78] sm:$0xff] }
  0xce   : > { %v2128_v39 = vor.u32 %v2644_v29, %v2127_v28  ;;  %v2654_v28 = vld [vmem:[#allocation8 + $0x1ac] sm:$0xf]  ;;  %v2177_v29 = vld [vmem:[#allocation8 + $0x1b8] sm:$0xf0] }
  0xcf   : > { %v463_v40 = vpop.f32.mrf.mxu2  ;;  %v483_v41 = vpop.f32.mrf.mxu3  ;;  %1280 = vmatmul.bf16.vlgmr.msrb.gmra.mxu0 %v3322_v36  ;;  %1293 = vmatmul.bf16.vlgmr.msrb.gmra.mxu1 %v3324_v37  ;;  %v2732_v53 = vld [vmem:[#allocation11 + $0x18] sm:$0xff] }
  0xd0   : > { %v464_v46 = vadd.f32 %v463_v40, %v396_v30  ;;  %v484_v47 = vadd.f32 %v483_v41, %v397_v31  ;;  %1376 = vmatpush.bf16.msrb.mxu0 %v2080_v32  ;;  %1389 = vmatpush.bf16.msrb.mxu1 %v2208_v33  ;;  %v2288_v30 = vor.u32 %v2684_v21, %v2287_v20  ;;  %v2271_v32 = vld [vmem:[#allocation8 + $0x268] sm:$0xf]  ;;  %v2680_v33 = vld [vmem:[#allocation8 + $0x274] sm:$0xf0]  ;;  %v2726_v20 = vld [vmem:[#allocation8 + $0x3ec] sm:$0xf] }
  0xd1   : > { %v2416_v31 = vor.u32 %v2716_v23, %v2415_v22  ;;  %v1983_v40 = vld [vmem:[#allocation8 + $0x28] sm:$0xf]  ;;  %v2608_v41 = vld [vmem:[#allocation8 + $0x34] sm:$0xf0]  ;;  %v2272_v44 = vor.u32 %v2680_v33, %v2271_v32  ;;  %v2465_v21 = vld [vmem:[#allocation8 + $0x3f8] sm:$0xf0] }
  0xd2   : > { %v488_v54 = vmax.f32 %v464_v46, 0.0  ;;  %v489_v55 = vmax.f32 %v484_v47, 0.0  ;;  %v2255_v46 = vld [vmem:[#allocation8 + $0x248] sm:$0xf]  ;;  %v2676_v47 = vld [vmem:[#allocation8 + $0x254] sm:$0xf0]  ;;  %v1984_v50 = vor.u32 %v2608_v41, %v1983_v40 }
  0xd3   : > { %v2690_v32 = vld [vmem:[#allocation8 + $0x2cc] sm:$0xf]  ;;  %v2321_v33 = vld [vmem:[#allocation8 + $0x2d8] sm:$0xf0] }
  0xd4   : > { %v3328_v61 = vpack.c.bf16 %v488_v54, %v488_v54  ;;  %v3330_v62 = vpack.c.bf16 %v489_v55, %v489_v55  ;;  %1377 = vmatpush.bf16.msrb.mxu0 %v2064_v42  ;;  %1390 = vmatpush.bf16.msrb.mxu1 %v2192_v48  ;;  %v2111_v42 = vld [vmem:[#allocation8 + $0x128] sm:$0xf]  ;;  %v2636_v55 = vld [vmem:[#allocation8 + $0x114] sm:$0xf0]  ;;  %v2618_v40 = vld [vmem:[#allocation8 + $0x8c] sm:$0xf] }
  0xd5   : > { %v2383_v48 = vld [vmem:[#allocation8 + $0x348] sm:$0xf]  ;;  %v2112_v51 = vor.u32 %v2640_v43, %v2111_v42  ;;  %v2033_v41 = vld [vmem:[#allocation8 + $0x98] sm:$0xf0]  ;;  %v2650_v42 = vld [vmem:[#allocation8 + $0x18c] sm:$0xf] }
  0xd6   : > { %1306 = vmatmul.bf16.vlgmr.msrb.gmra.mxu2 %v3328_v61  ;;  %1319 = vmatmul.bf16.vlgmr.msrb.gmra.mxu3 %v3330_v62  ;;  %v2095_v54 = vld [vmem:[#allocation8 + $0x108] sm:$0xf]  ;;  %v2384_v59 = vor.u32 %v2708_v49, %v2383_v48  ;;  %v2161_v43 = vld [vmem:[#allocation8 + $0x198] sm:$0xf0]  ;;  %v2718_v48 = vld [vmem:[#allocation8 + $0x3ac] sm:$0xf] }
  0xd7   : > { %1402 = vmatpush.bf16.msrb.mxu2 %v2336_v56  ;;  %1415 = vmatpush.bf16.msrb.mxu3 %v2464_v57  ;;  %v2630_v56 = vld [vmem:[#allocation8 + $0xec] sm:$0xf]  ;;  %v2081_v57 = vld [vmem:[#allocation8 + $0xf8] sm:$0xf0]  ;;  %v2096_v5 = vor.u32 %v2636_v55, %v2095_v54 }
  0xd8   : > { %1378 = vmatpush.bf16.msrb.mxu0 %v2048_v58  ;;  %1391 = vmatpush.bf16.msrb.mxu1 %v2176_v63  ;;  %v2256_v58 = vor.u32 %v2676_v47, %v2255_v46  ;;  %v2209_v63 = vld [vmem:[#allocation8 + $0x1f8] sm:$0xf0]  ;;  %v2686_v46 = vld [vmem:[#allocation8 + $0x2ac] sm:$0xf] }
  0xd9   : > { %v2305_v47 = vld [vmem:[#allocation8 + $0x2b8] sm:$0xf0]  ;;  %v2646_v54 = vld [vmem:[#allocation8 + $0x16c] sm:$0xf] }
  0xda   : > { %v2433_v49 = vld [vmem:[#allocation8 + $0x3b8] sm:$0xf0] }
  0xdb   : > { %1403 = vmatpush.bf16.msrb.mxu2 %v2320_v6  ;;  %1416 = vmatpush.bf16.msrb.mxu3 %v2448_v7  ;;  %v2084_v6 = vor.u32 %v2630_v56, %v2081_v57  ;;  %v2212_v7 = vor.u32 %v2662_v60, %v2209_v63  ;;  %v2145_v55 = vld [vmem:[#allocation8 + $0x178] sm:$0xf0]  ;;  %v2308_v56 = vor.u32 %v2686_v46, %v2305_v47  ;;  %v2714_v60 = vld [vmem:[#allocation8 + $0x38c] sm:$0xf]  ;;  %v2735_v47 = vld [vmem:[#allocation11 + $0x30] sm:$0xff] }
  0xdc   : > { %1379 = vmatpush.bf16.msrb.mxu0 %v2032_v9  ;;  %1392 = vmatpush.bf16.msrb.mxu1 %v2160_v10  ;;  %v2065_v9 = vld [vmem:[#allocation8 + $0xd8] sm:$0xf0]  ;;  %v2658_v10 = vld [vmem:[#allocation8 + $0x1cc] sm:$0xf]  ;;  %v2436_v57 = vor.u32 %v2718_v48, %v2433_v49  ;;  %v2148_v1 = vor.u32 %v2646_v54, %v2145_v55  ;;  %v2731_v54 = vld [vmem:[#allocation11 + $0x10] sm:$0xff] }
  0xdd   : > { %v2068_v22 = vor.u32 %v2626_v8, %v2065_v9  ;;  %v2196_v23 = vor.u32 %v2658_v10, %v2193_v13  ;;  %v2417_v63 = vld [vmem:[#allocation8 + $0x398] sm:$0xf0]  ;;  %v2678_v8 = vld [vmem:[#allocation8 + $0x26c] sm:$0xf]  ;;  %v2743_v55 = vld [vmem:[#allocation11 + $0x70] sm:$0xff] }
  0xde   : > { %v2273_v9 = vld [vmem:[#allocation8 + $0x278] sm:$0xf0]  ;;  %v2710_v10 = vld [vmem:[#allocation8 + $0x36c] sm:$0xf] }
  0xdf   : > { %1404 = vmatpush.bf16.msrb.mxu2 %v2304_v18  ;;  %1417 = vmatpush.bf16.msrb.mxu3 %v2432_v19  ;;  %v2694_v18 = vld [vmem:[#allocation8 + $0x2ec] sm:$0xf]  ;;  %v2337_v19 = vld [vmem:[#allocation8 + $0x2f8] sm:$0xf0] }
  0xe0   : > { %1332 = vmatmul.bf16.vlgmr.msra.gmra.mxu0 %v3322_v36  ;;  %1345 = vmatmul.bf16.vlgmr.msra.gmra.mxu1 %v3324_v37  ;;  %v2353_v46 = vld [vmem:[#allocation8 + $0x318] sm:$0xf0] }
  0xe1   : > { %1380 = vmatpush.bf16.msrb.mxu0 %v2016_v24  ;;  %1393 = vmatpush.bf16.msrb.mxu1 %v2144_v25  ;;  %v2622_v24 = vld [vmem:[#allocation8 + $0xac] sm:$0xf]  ;;  %v2224_v25 = vor.u32 %v2668_v15, %v2223_v14  ;;  %v1985_v15 = vld [vmem:[#allocation8 + $0x38] sm:$0xf0] }
  0xe2   : > { %v2606_v14 = vld [vmem:[#allocation8 + $0x2c] sm:$0xf] }
  0xe3   : > { %1405 = vmatpush.bf16.msrb.mxu2 %v2288_v30  ;;  %1418 = vmatpush.bf16.msrb.mxu3 %v2416_v31  ;;  %v2340_v30 = vor.u32 %v2694_v18, %v2337_v19  ;;  %v2468_v31 = vor.u32 %v2726_v20, %v2465_v21  ;;  %v2276_v18 = vor.u32 %v2678_v8, %v2273_v9  ;;  %v2674_v20 = vld [vmem:[#allocation8 + $0x24c] sm:$0xf]  ;;  %v2257_v21 = vld [vmem:[#allocation8 + $0x258] sm:$0xf0] }
  0xe5   : > { %1381 = vmatpush.bf16.msrb.mxu0 %v2000_v38  ;;  %1394 = vmatpush.bf16.msrb.mxu1 %v2128_v39  ;;  %v2052_v38 = vor.u32 %v2622_v24, %v2049_v27  ;;  %v2180_v39 = vor.u32 %v2654_v28, %v2177_v29  ;;  %v1988_v24 = vor.u32 %v2606_v14, %v1985_v15  ;;  %v1969_v27 = vld [vmem:[#allocation8 + $0x18] sm:$0xf0]  ;;  %v2634_v28 = vld [vmem:[#allocation8 + $0x10c] sm:$0xf] }
  0xe6   : > { %1358 = vmatmul.bf16.vlgmr.msra.gmra.mxu2 %v3328_v61  ;;  %1371 = vmatmul.bf16.vlgmr.msra.gmra.mxu3 %v3330_v62  ;;  %v2097_v29 = vld [vmem:[#allocation8 + $0x118] sm:$0xf0]  ;;  %v2746_v15 = vld [vmem:[#allocation11 + $0x88] sm:$0xff] }
  0xe7   : > { %1406 = vmatpush.bf16.msrb.mxu2 %v2272_v44  ;;  %1419 = vmatpush.bf16.msrb.mxu3 %v2400_v45  ;;  %v2324_v44 = vor.u32 %v2690_v32, %v2321_v33  ;;  %v2452_v45 = vor.u32 %v2722_v34, %v2449_v35  ;;  %v2670_v32 = vld [vmem:[#allocation8 + $0x22c] sm:$0xf]  ;;  %v2241_v33 = vld [vmem:[#allocation8 + $0x238] sm:$0xf0] }
  0xe8   : > { %v2702_v34 = vld [vmem:[#allocation8 + $0x32c] sm:$0xf]  ;;  %v2369_v35 = vld [vmem:[#allocation8 + $0x338] sm:$0xf0] }
  0xe9   : > { %1382 = vmatpush.bf16.msrb.mxu0 %v1984_v50  ;;  %1395 = vmatpush.bf16.msrb.mxu1 %v2112_v51  ;;  %v2036_v50 = vor.u32 %v2618_v40, %v2033_v41  ;;  %v2164_v51 = vor.u32 %v2650_v42, %v2161_v43  ;;  %v2736_v40 = vld [vmem:[#allocation11 + $0x38] sm:$0xff]  ;;  %v2244_v41 = vor.u32 %v2670_v32, %v2241_v33  ;;  %v2666_v43 = vld [vmem:[#allocation8 + $0x20c] sm:$0xf] }
  0xea   : > { %v2372_v42 = vor.u32 %v2702_v34, %v2369_v35  ;;  %v2757_v35 = vld [vmem:[#allocation11 + $0xe0] sm:$0xff] }
  0xeb   : > { %1407 = vmatpush.bf16.msrb.mxu2 %v2256_v58  ;;  %1420 = vmatpush.bf16.msrb.mxu3 %v2384_v59  ;;  %v2682_v58 = vld [vmem:[#allocation8 + $0x28c] sm:$0xf]  ;;  %v2289_v59 = vld [vmem:[#allocation8 + $0x298] sm:$0xf0] }
  0xed   : > { %1383 = vmatpush.bf16.msrb.mxu0 %v1968_v4  ;;  %1396 = vmatpush.bf16.msrb.mxu1 %v2096_v5  ;;  %v2642_v4 = vld [vmem:[#allocation8 + $0x14c] sm:$0xf]  ;;  %v2129_v5 = vld [vmem:[#allocation8 + $0x158] sm:$0xf0] }
  0xee   : > { %v2132_v13 = vor.u32 %v2642_v4, %v2129_v5  ;;  %v2737_v4 = vld [vmem:[#allocation11 + $0x40] sm:$0xff] }
  0xef   : > { %1408 = vmatpush.bf16.msrb.mxu2 %v2240_v11  ;;  %1421 = vmatpush.bf16.msrb.mxu3 %v2368_v12  ;;  %v2401_v11 = vld [vmem:[#allocation8 + $0x378] sm:$0xf0]  ;;  %v2004_v12 = vor.u32 %v2610_v2, %v2001_v3  ;;  %v2749_v5 = vld [vmem:[#allocation11 + $0xa0] sm:$0xff] }
  0xf0   : > { %1384 = vmatmul.bf16.vlgmr.msrb.gmra.mxu0 %v3322_v36  ;;  %1397 = vmatmul.bf16.vlgmr.msrb.gmra.mxu1 %v3324_v37  ;;  %v2404_v19 = vor.u32 %v2710_v10, %v2401_v11  ;;  %v2747_v10 = vld [vmem:[#allocation11 + $0x90] sm:$0xff] }
  0xf1   : > { %1428 = vmatpush.bf16.msra.mxu0 %v2084_v6  ;;  %1441 = vmatpush.bf16.msra.mxu1 %v2212_v7  ;;  %v2292_v6 = vor.u32 %v2682_v58, %v2289_v59  ;;  %v2420_v7 = vor.u32 %v2714_v60, %v2417_v63  ;;  %v2739_v58 = vld [vmem:[#allocation11 + $0x50] sm:$0xff]  ;;  %v2738_v60 = vld [vmem:[#allocation11 + $0x48] sm:$0xff] }
  0xf2   : > { %v2751_v59 = vld [vmem:[#allocation11 + $0xb0] sm:$0xff]  ;;  %v2750_v63 = vld [vmem:[#allocation11 + $0xa8] sm:$0xff] }
  0xf3   : > { %1409 = vmatpush.bf16.msrb.mxu2 %v2224_v25  ;;  %1422 = vmatpush.bf16.msrb.mxu3 %v2352_v26  ;;  %v2116_v25 = vor.u32 %v2638_v16, %v2113_v17  ;;  %v2602_v26 = vld [vmem:[#allocation8 + $0xc] sm:$0xf] }
  0xf5   : > { %1429 = vmatpush.bf16.msra.mxu0 %v2068_v22  ;;  %1442 = vmatpush.bf16.msra.mxu1 %v2196_v23  ;;  %v2706_v22 = vld [vmem:[#allocation8 + $0x34c] sm:$0xf]  ;;  %v2385_v23 = vld [vmem:[#allocation8 + $0x358] sm:$0xf0] }
  0xf6   : > { %1410 = vmatmul.bf16.vlgmr.msrb.gmra.mxu2 %v3328_v61  ;;  %1423 = vmatmul.bf16.vlgmr.msrb.gmra.mxu3 %v3330_v62 }
  0xf7   : > { %1454 = vmatpush.bf16.msra.mxu2 %v2340_v30  ;;  %1467 = vmatpush.bf16.msra.mxu3 %v2468_v31  ;;  %v2260_v30 = vor.u32 %v2674_v20, %v2257_v21  ;;  %v2388_v31 = vor.u32 %v2706_v22, %v2385_v23  ;;  %v2745_v20 = vld [vmem:[#allocation11 + $0x80] sm:$0xff]  ;;  %v2760_v21 = vld [vmem:[#allocation11 + $0xf8] sm:$0xff] }
  0xf9   : > { %1430 = vmatpush.bf16.msra.mxu0 %v2052_v38  ;;  %1443 = vmatpush.bf16.msra.mxu1 %v2180_v39  ;;  %v1972_v38 = vor.u32 %v2602_v26, %v1969_v27  ;;  %v2100_v39 = vor.u32 %v2634_v28, %v2097_v29  ;;  %v2759_v26 = vld [vmem:[#allocation11 + $0xf0] sm:$0xff]  ;;  %v2758_v28 = vld [vmem:[#allocation11 + $0xe8] sm:$0xff] }
  0xfb   : > { %1455 = vmatpush.bf16.msra.mxu2 %v2324_v44  ;;  %1468 = vmatpush.bf16.msra.mxu3 %v2452_v45  ;;  %v2225_v44 = vld [vmem:[#allocation8 + $0x218] sm:$0xf0]  ;;  %v2698_v45 = vld [vmem:[#allocation8 + $0x30c] sm:$0xf] }
  0xfc   : > { %v2228_v48 = vor.u32 %v2666_v43, %v2225_v44  ;;  %v2356_v49 = vor.u32 %v2698_v45, %v2353_v46 }
  0xfd   : > { %1431 = vmatpush.bf16.msra.mxu0 %v2036_v50  ;;  %1444 = vmatpush.bf16.msra.mxu1 %v2164_v51  ;;  %v2734_v50 = vld [vmem:[#allocation11 + $0x28] sm:$0xff]  ;;  %v2733_v51 = vld [vmem:[#allocation11 + $0x20] sm:$0xff] }
  0xff   : > { %1456 = vmatpush.bf16.msra.mxu2 %v2308_v56  ;;  %1469 = vmatpush.bf16.msra.mxu3 %v2436_v57  ;;  %v2729_v56 = vld [vmem:[#allocation11] sm:$0xff] }
 0x100   : > { %v2741_v57 = vld [vmem:[#allocation11 + $0x60] sm:$0xff] }
 0x101   : > { %1432 = vmatpush.bf16.msra.mxu0 %v2020_v0  ;;  %1445 = vmatpush.bf16.msra.mxu1 %v2148_v1  ;;  %v3346_v0 = vld [vmem:[#allocation10] sm:$0xf] }
 0x102   : > { %v624_v3 = vperm.slane %v3346_v0, 0  ;;  %v625_v23 = vperm.slane %v3346_v0, 1  ;;  %v626_v44 = vperm.slane %v3346_v0, 2 }
 0x103   : > { %1457 = vmatpush.bf16.msra.mxu2 %v2292_v6  ;;  %1470 = vmatpush.bf16.msra.mxu3 %v2420_v7  ;;  %v2748_v7 = vld [vmem:[#allocation11 + $0x98] sm:$0xff] }
 0x105   : > { %1433 = vmatpush.bf16.msra.mxu0 %v2004_v12  ;;  %1446 = vmatpush.bf16.msra.mxu1 %v2132_v13 }
 0x107   : > { %1458 = vmatpush.bf16.msra.mxu2 %v2276_v18  ;;  %1471 = vmatpush.bf16.msra.mxu3 %v2404_v19 }
 0x109   : > { %1434 = vmatpush.bf16.msra.mxu0 %v1988_v24  ;;  %1447 = vmatpush.bf16.msra.mxu1 %v2116_v25 }
 0x10b   : > { %1459 = vmatpush.bf16.msra.mxu2 %v2260_v30  ;;  %1472 = vmatpush.bf16.msra.mxu3 %v2388_v31 }
 0x10d   : > { %1435 = vmatpush.bf16.msra.mxu0 %v1972_v38  ;;  %1448 = vmatpush.bf16.msra.mxu1 %v2100_v39 }
 0x10f   : > { %1460 = vmatpush.bf16.msra.mxu2 %v2244_v41  ;;  %1473 = vmatpush.bf16.msra.mxu3 %v2372_v42  ;;  %v2756_v41 = vld [vmem:[#allocation11 + $0xd8] sm:$0xff] }
 0x110   : > { %1436 = vmatmul.bf16.vlgmr.msra.gmra.mxu0 %v3322_v36  ;;  %1449 = vmatmul.bf16.vlgmr.msra.gmra.mxu1 %v3324_v37  ;;  %v2730_v36 = vld [vmem:[#allocation11 + $0x8] sm:$0xff] }
 0x111   : > { %1748 = vmatpush.bf16.msrb.mxu0 %v2736_v40  ;;  %1761 = vmatpush.bf16.msrb.mxu1 %v2744_v52  ;;  %v2742_v37 = vld [vmem:[#allocation11 + $0x68] sm:$0xff] }
 0x113   : > { %1461 = vmatpush.bf16.msra.mxu2 %v2228_v48  ;;  %1474 = vmatpush.bf16.msra.mxu3 %v2356_v49 }
 0x115   : > { %1749 = vmatpush.bf16.msrb.mxu0 %v2735_v47  ;;  %1762 = vmatpush.bf16.msrb.mxu1 %v2743_v55  ;;  %v2755_v47 = vld [vmem:[#allocation11 + $0xd0] sm:$0xff]  ;;  %v2753_v55 = vld [vmem:[#allocation11 + $0xc0] sm:$0xff] }
 0x116   : > { %1462 = vmatmul.bf16.vlgmr.msra.gmra.mxu2 %v3328_v61  ;;  %1475 = vmatmul.bf16.vlgmr.msra.gmra.mxu3 %v3330_v62  ;;  %v2740_v61 = vld [vmem:[#allocation11 + $0x58] sm:$0xff] }
 0x117   : > { %v2752_v62 = vld [vmem:[#allocation11 + $0xb8] sm:$0xff]  ;;  %1787 = vmatpush.bf16.msrb.mxu3 %v2760_v21 }
 0x118   : > { %1774 = vmatpush.bf16.msrb.mxu2 %v2752_v62 }
 0x119   : > { %1750 = vmatpush.bf16.msrb.mxu0 %v2734_v50  ;;  %1763 = vmatpush.bf16.msrb.mxu1 %v2742_v37 }
 0x11b   : > { %1788 = vmatpush.bf16.msrb.mxu3 %v2759_v26 }
 0x11c   : > { %1775 = vmatpush.bf16.msrb.mxu2 %v2751_v59 }
 0x11d   : > { %1751 = vmatpush.bf16.msrb.mxu0 %v2733_v51  ;;  %1764 = vmatpush.bf16.msrb.mxu1 %v2741_v57  ;;  %v2754_v51 = vld [vmem:[#allocation11 + $0xc8] sm:$0xff] }
 0x11f   : > { %1789 = vmatpush.bf16.msrb.mxu3 %v2758_v28 }
 0x120   : > { %1776 = vmatpush.bf16.msrb.mxu2 %v2750_v63 }
 0x121   : > { %1752 = vmatpush.bf16.msrb.mxu0 %v2732_v53  ;;  %1765 = vmatpush.bf16.msrb.mxu1 %v2740_v61 }
 0x123   : > { %1790 = vmatpush.bf16.msrb.mxu3 %v2757_v35 }
 0x124   : > { %1777 = vmatpush.bf16.msrb.mxu2 %v2749_v5 }
 0x125   : > { %1753 = vmatpush.bf16.msrb.mxu0 %v2731_v54  ;;  %1766 = vmatpush.bf16.msrb.mxu1 %v2739_v58 }
 0x127   : > { %1791 = vmatpush.bf16.msrb.mxu3 %v2756_v41 }
 0x128   : > { %1778 = vmatpush.bf16.msrb.mxu2 %v2748_v7 }
 0x129   : > { %1754 = vmatpush.bf16.msrb.mxu0 %v2730_v36  ;;  %1767 = vmatpush.bf16.msrb.mxu1 %v2738_v60  ;;  %v627_v60 = vperm.slane %v3346_v0, 3 }
 0x12b   : > { %1792 = vmatpush.bf16.msrb.mxu3 %v2755_v47 }
 0x12c   : > { %1779 = vmatpush.bf16.msrb.mxu2 %v2747_v10 }
 0x12d   : > { %1755 = vmatpush.bf16.msrb.mxu0 %v2729_v56  ;;  %1768 = vmatpush.bf16.msrb.mxu1 %v2737_v4 }
 0x12f   : > { %1793 = vmatpush.bf16.msrb.mxu3 %v2754_v51 }
 0x130   : > { %1780 = vmatpush.bf16.msrb.mxu2 %v2746_v15 }
 0x133   : > { %1794 = vmatpush.bf16.msrb.mxu3 %v2753_v55 }
 0x134   : > { %1781 = vmatpush.bf16.msrb.mxu2 %v2745_v20 }
 0x14c   : > { %v1281_v1 = vpop.f32.mrf.mxu0  ;;  %v1294_v2 = vpop.f32.mrf.mxu1 }
 0x14d   : > { %v1282_v6 = vadd.f32 %v1281_v1, %v624_v3 }
 0x14f   : > { %v1295_v11 = vadd.f32 %v1294_v2, %v1282_v6 }
 0x154   : > { %v1283_v8 = vpop.f32.mrf.mxu0  ;;  %v1296_v9 = vpop.f32.mrf.mxu1 }
 0x159   : > { %v1307_v12 = vpop.f32.mrf.mxu2  ;;  %v1320_v13 = vpop.f32.mrf.mxu3 }
 0x15a   : > { %v1308_v14 = vadd.f32 %v1307_v12, %v1295_v11 }
 0x15c   : > { %v1321_v16 = vadd.f32 %v1320_v13, %v1308_v14 }
 0x15d   : > { %v1333_v17 = vpop.f32.mrf.mxu0  ;;  %v1346_v18 = vpop.f32.mrf.mxu1 }
 0x15e   : > { %v1480_v19 = vmax.f32 %v1321_v16, 0.0  ;;  %v1334_v27 = vadd.f32 %v1333_v17, %v625_v23  ;;  %v2864_v17 = vld [vmem:[%s3396_s6] ss:$0 sm:$0xff] }
 0x160   : > { %v1484_v22 = vpack.c.bf16 %v1480_v19, %v1480_v19  ;;  %v1347_v31 = vadd.f32 %v1346_v18, %v1334_v27 }
 0x161   : > { %v1309_v24 = vpop.f32.mrf.mxu2  ;;  %v1322_v25 = vpop.f32.mrf.mxu3 }
 0x162   : > { %1756 = vmatmul.bf16.vlgmr.msrb.gmra.mxu0 %v1484_v22 }
 0x165   : > { %v1335_v29 = vpop.f32.mrf.mxu0  ;;  %v1348_v30 = vpop.f32.mrf.mxu1 }
 0x169   : > { %v1359_v32 = vpop.f32.mrf.mxu2  ;;  %v1372_v33 = vpop.f32.mrf.mxu3 }
 0x16a   : > { %v1360_v34 = vadd.f32 %v1359_v32, %v1347_v31 }
 0x16c   : > { %v1373_v38 = vadd.f32 %v1372_v33, %v1360_v34 }
 0x16d   : > { %v1385_v39 = vpop.f32.mrf.mxu0  ;;  %v1398_v40 = vpop.f32.mrf.mxu1 }
 0x16e   : > { %v1481_v42 = vmax.f32 %v1373_v38, 0.0  ;;  %v1386_v48 = vadd.f32 %v1385_v39, %v626_v44 }
 0x170   : > { %v1485_v43 = vpack.c.bf16 %v1481_v42, %v1481_v42  ;;  %v1399_v52 = vadd.f32 %v1398_v40, %v1386_v48 }
 0x171   : > { %v1361_v45 = vpop.f32.mrf.mxu2  ;;  %v1374_v46 = vpop.f32.mrf.mxu3 }
 0x172   : > { %1769 = vmatmul.bf16.vlgmr.msrb.gmra.mxu1 %v1485_v43 }
 0x175   : > { %v1387_v49 = vpop.f32.mrf.mxu0  ;;  %v1400_v50 = vpop.f32.mrf.mxu1 }
 0x179   : > { %v1411_v53 = vpop.f32.mrf.mxu2  ;;  %v1424_v54 = vpop.f32.mrf.mxu3 }
 0x17a   : > { %v1412_v36 = vadd.f32 %v1411_v53, %v1399_v52 }
 0x17c   : > { %v1425_v37 = vadd.f32 %v1424_v54, %v1412_v36 }
 0x17e   : > { %v1482_v56 = vmax.f32 %v1425_v37, 0.0 }
 0x180   : > { %v1486_v57 = vpack.c.bf16 %v1482_v56, %v1482_v56 }
 0x181   : > { %v1413_v61 = vpop.f32.mrf.mxu2  ;;  %v1426_v62 = vpop.f32.mrf.mxu3 }
 0x182   : > { %1782 = vmatmul.bf16.vlgmr.msrb.gmra.mxu2 %v1486_v57 }
 0x18d   : > { %v1437_v58 = vpop.f32.mrf.mxu0  ;;  %v1450_v59 = vpop.f32.mrf.mxu1 }
 0x18e   : > { %v1438_v63 = vadd.f32 %v1437_v58, %v627_v60 }
 0x190   : > { %v1451_v3 = vadd.f32 %v1450_v59, %v1438_v63 }
 0x195   : > { %v1439_v1 = vpop.f32.mrf.mxu0  ;;  %v1452_v2 = vpop.f32.mrf.mxu1 }
 0x199   : > { %v1463_v4 = vpop.f32.mrf.mxu2  ;;  %v1476_v5 = vpop.f32.mrf.mxu3 }
 0x19a   : > { %v1464_v6 = vadd.f32 %v1463_v4, %v1451_v3 }
 0x19c   : > { %v1477_v7 = vadd.f32 %v1476_v5, %v1464_v6 }
 0x19e   : > { %v1483_v8 = vmax.f32 %v1477_v7, 0.0 }
 0x1a0   : > { %v1487_v9 = vpack.c.bf16 %v1483_v8, %v1483_v8 }
 0x1a1   : > { %v1465_v10 = vpop.f32.mrf.mxu2  ;;  %v1478_v11 = vpop.f32.mrf.mxu3 }
 0x1a2   : > { %1795 = vmatmul.bf16.vlgmr.msrb.gmra.mxu3 %v1487_v9 }
 0x1df   : > { %v1757_v12 = vpop.f32.mrf.mxu0 }
 0x1e0   : > { %v1758_v18 = vadd.f32 %v2864_v17, %v1757_v12 }
 0x1e7   : > { %v1759_v13 = vpop.f32.mrf.mxu0 }
 0x1ef   : > { %v1770_v14 = vpop.f32.mrf.mxu1 }
 0x1f0   : > { %v1771_v19 = vadd.f32 %v1770_v14, %v1758_v18 }
 0x1f7   : > { %v1772_v15 = vpop.f32.mrf.mxu1 }
 0x205   : > { %v1783_v0 = vpop.f32.mrf.mxu2 }
 0x206   : > { %v1784_v20 = vadd.f32 %v1783_v0, %v1771_v19 }
 0x20d   : > { %v1785_v16 = vpop.f32.mrf.mxu2 }
 0x225   : > { %v1796_v21 = vpop.f32.mrf.mxu3 }
 0x226   : > { %v1797_v22 = vadd.f32 %v1796_v21, %v1784_v20 }
 0x228   : > { %1800 = vst [vmem:[%s374_s10] sm:$0xff] %v1797_v22 }
 0x229   : > { %3072 = shalt.err (!%p3069_p9)
}
 0x22a   : > { %2783 = dma.vmem_to_hbm [thread:$0]  (%p3262_p13), %s1815_s17, 128, %s1817_s14, %s1802_s18  }
 0x22d   : > { %v1798_v23 = vpop.f32.mrf.mxu3 }
 0x22e PF: > { %s1828_s30 = sand.u32 1, %s3111_s24   ;;  %p3406_p10 = scmp.ge.s32.totalorder %s3123_s27, 2 }
 0x22f   : > { %s1829_s20 = scalar_lea.sflag [#allocation4], %s1828_s30 }
 0x230   : > { %p2806_p11 = pnand %p3406_p10, %p3267_p4 }
 0x232   : > { %p2807_p0 = pneg %p2806_p11 }
 0x234   : > { %3106 = dma.done.wait (%p2807_p0), %s1829_s20, 128  }
 0x235   : > { %3108 = vsyncadd (%p2807_p0), %s1829_s20, 4294967168  ;;  %p23_p2 = scmp.ge.s32.totalorder %s3242_s28, 4   ;;  %s3407_s24 = smov %s3115_s25 }
 0x236   : > { %s3408_s25 = smov %s3119_s26  ;;  %s3409_s26 = smov %s3254_s12 }
 0x237   : > { %s3410_s27 = smov %s3242_s28  ;;  %25 = sbr.rel (!%p23_p2) target bundleno = 10 (0xa), region = 113 }
 0x23c   :  { %1835 = vsyncpa [#allocation3], 1 }
 0x23d   :  { %1837 = vsyncpa [#allocation3 + $0x1], 1 }
 0x23e   :  { %1838 = vsyncpa [#allocation6], 1 }
 0x23f   :  { %1839 = vsyncpa [#allocation9], 1 }
 0x240   :  { %1840 = vsyncpa [#allocation12], 1 }
 0x241   :  { %1841 = vsyncpa [#allocation4], 1 }
 0x242   :  { %1843 = vsyncpa [#allocation4 + $0x1], 1 }

</bundles_post_ra>
